<compile_context>
chip_gen: v7x
topology: tpu7x:2x2x1
jax: 0.10.0
libtpu: 0.0.40
codegen_flags: <defaults>
</compile_context>

<pallas_src>
import jax
import jax.numpy as jnp
from jax.experimental import pallas as pl
from jax.experimental.pallas import tpu as pltpu


def fused_pool_linear_kernel(x_ref, wt_ref, b_ref, o_ref, pooled_ref):
    # Grid: (branch i, Dout-tile j)
    #   x_ref:  (1, B, L, D)   token features for branch i (resident across j)
    #   wt_ref: (1, D, TN)     bf16 weight tile, pre-transposed, 1/L folded in
    #   b_ref:  (1, 1, TN)     bias tile (f32)
    #   o_ref:  (1, B, TN)     output tile (f32)
    #   pooled_ref: (B, D)     f32 VMEM scratch — token-summed features
    j = pl.program_id(1)

    @pl.when(j == 0)
    def _():
        # Token pooling once per branch; 1/L is folded into the weights, so sum not mean.
        pooled_ref[...] = jnp.sum(x_ref[0].astype(jnp.float32), axis=1)

    acc = jnp.dot(
        pooled_ref[...],
        wt_ref[0].astype(jnp.float32),      # bf16 stored in HBM, f32 math in-kernel
        preferred_element_type=jnp.float32,
    )
    o_ref[...] = (acc + b_ref[0]).astype(o_ref.dtype)[None, :, :]


def fused_mean_linear(x, wt, b, *, tn=512):
    """x: (2, B, L, D) f32;  wt: (2, D, Dout) bf16 (pre-transposed, /L);  b: (2, 1, Dout) f32.

    Returns (2, B, Dout) f32 = mean(x, axis=2) @ W.T + b for both branches, fused.
    """
    nbr, B, L, D = x.shape
    Dout = wt.shape[-1]
    tn = min(tn, Dout)
    assert Dout % tn == 0, "Dout must be divisible by the output tile width"
    nt = Dout // tn

    cost = pl.CostEstimate(
        flops=2 * nbr * B * D * Dout + nbr * B * L * D,
        transcendentals=0,
        bytes_accessed=(
            x.size * x.dtype.itemsize
            + wt.size * wt.dtype.itemsize
            + b.size * b.dtype.itemsize
            + nbr * B * Dout * 4
        ),
    )

    return pl.pallas_call(
        fused_pool_linear_kernel,
        out_shape=jax.ShapeDtypeStruct((nbr, B, Dout), jnp.float32),
        grid_spec=pltpu.PrefetchScalarGridSpec(
            num_scalar_prefetch=0,
            grid=(nbr, nt),
            in_specs=[
                pl.BlockSpec((1, B, L, D), lambda i, j: (i, 0, 0, 0)),
                pl.BlockSpec((1, D, tn), lambda i, j: (i, 0, j)),
                pl.BlockSpec((1, 1, tn), lambda i, j: (i, 0, j)),
            ],
            out_specs=pl.BlockSpec((1, B, tn), lambda i, j: (i, 0, j)),
            scratch_shapes=[pltpu.VMEM((B, D), jnp.float32)],
        ),
        compiler_params=pltpu.CompilerParams(
            # branch axis parallel (v7x: one branch per TensorCore);
            # Dout-tile axis arbitrary (pooled scratch reused across tiles of a branch).
            dimension_semantics=("parallel", "arbitrary"),
        ),
        cost_estimate=cost,
    )(x, wt, b)


def prepare_params(w_cl, b_cl, w_cb, b_cb, num_tokens):
    """One-time parameter preprocessing (done at load time, NOT per call):
    transpose to (D_in, D_out), fold the 1/L mean scale, cast to bf16, stack branches."""
    wt = jnp.stack([w_cl.T, w_cb.T]) / float(num_tokens)   # (2, D, Dout)
    return {
        "wt": wt.astype(jnp.bfloat16),
        "b": jnp.stack([b_cl, b_cb]).reshape(2, 1, -1).astype(jnp.float32),
    }


def model_forward(x_cl, x_cb, params):
    """Mirrors Model.forward (post-backbone part) for both branches in one kernel launch."""
    x = jnp.stack([x_cl, x_cb])                 # (2, B, L, D) — tiny vs. the 4 MiB weights
    out = fused_mean_linear(x, params["wt"], params["b"])
    return out[0], out[1]


if __name__ == "__main__":
    key = jax.random.PRNGKey(0)
    B, L, D, Dout = 2, 8, 1024, 1024  # small token count; channel dims fixed by Linear(1024,1024)

    k1, k2, k3, k4, k5, k6 = jax.random.split(key, 6)
    x_cl = jax.random.normal(k1, (B, L, D), jnp.float32)
    x_cb = jax.random.normal(k2, (B, L, D), jnp.float32)
    w_cl = jax.random.normal(k3, (Dout, D), jnp.float32) * 0.02
    b_cl = jax.random.normal(k4, (Dout,), jnp.float32) * 0.02
    w_cb = jax.random.normal(k5, (Dout, D), jnp.float32) * 0.02
    b_cb = jax.random.normal(k6, (Dout,), jnp.float32) * 0.02

    params = prepare_params(w_cl, b_cl, w_cb, b_cb, L)

    y_cl, y_cb = model_forward(x_cl, x_cb, params)
    jax.block_until_ready((y_cl, y_cb))
    assert y_cl.shape == (B, Dout) and y_cb.shape == (B, Dout)

    # Check 1: against a reference using the SAME bf16-stored weights the kernel reads
    # (isolates kernel correctness from the deliberate bf16 weight quantization).
    wt_f32 = params["wt"].astype(jnp.float32)  # (2, D, Dout), already /L
    ref_cl_q = jnp.sum(x_cl, axis=1) @ wt_f32[0] + b_cl
    ref_cb_q = jnp.sum(x_cb, axis=1) @ wt_f32[1] + b_cb
    assert jnp.allclose(y_cl, ref_cl_q, atol=2e-3, rtol=2e-3)
    assert jnp.allclose(y_cb, ref_cb_q, atol=2e-3, rtol=2e-3)

    # Check 2: against the exact f32 PyTorch semantics (mean -> Linear).  Looser tolerance
    # only because the weights are intentionally stored in bf16 (HBM-bandwidth optimization);
    # accumulation is f32 throughout.
    ref_cl = jnp.mean(x_cl, axis=1) @ w_cl.T + b_cl
    ref_cb = jnp.mean(x_cb, axis=1) @ w_cb.T + b_cb
    assert jnp.allclose(y_cl, ref_cl, atol=2e-2, rtol=2e-2)
    assert jnp.allclose(y_cb, ref_cb, atol=2e-2, rtol=2e-2)

    print("KERNEL_OK")
</pallas_src>

<mosaic_0001>
module attributes {stable_mosaic.version = 11 : i64} {
  func.func @fused_pool_linear_kernel(%arg0: i32, %arg1: i32, %arg2: memref<1x2x8x1024xf32, #tpu.memory_space<vmem>>, %arg3: memref<1x1024x512xbf16, #tpu.memory_space<vmem>>, %arg4: memref<1x1x512xf32, #tpu.memory_space<vmem>>, %arg5: memref<1x2x512xf32, #tpu.memory_space<vmem>>, %arg6: memref<2x1024xf32, #tpu.memory_space<vmem>>) attributes {dimension_semantics = [#tpu.dimension_semantics<parallel>, #tpu.dimension_semantics<arbitrary>], iteration_bounds = array<i64: 2, 2>, scalar_prefetch = 0 : i64, scratch_operands = 1 : i64, tpu.core_type = #tpu.core_type<tc>, window_params = [{transform_indices = @transform_0, window_bounds = array<i64: 1, 2, 8, 1024>}, {transform_indices = @transform_1, window_bounds = array<i64: 1, 1024, 512>}, {transform_indices = @transform_2, window_bounds = array<i64: 1, 1, 512>}, {transform_indices = @transform_3, window_bounds = array<i64: 1, 2, 512>}]} {
    %c0_i32 = arith.constant 0 : i32
    %0 = arith.cmpi eq, %arg1, %c0_i32 : i32
    %1 = arith.extui %0 : i1 to i32
    %c0_i32_0 = arith.constant 0 : i32
    %2 = arith.cmpi ne, %1, %c0_i32_0 : i32
    scf.if %2 {
      %c0_11 = arith.constant 0 : index
      %c0_12 = arith.constant 0 : index
      %c0_13 = arith.constant 0 : index
      %c0_14 = arith.constant 0 : index
      %14 = vector.load %arg2[%c0_11, %c0_12, %c0_13, %c0_14] : memref<1x2x8x1024xf32, #tpu.memory_space<vmem>>, vector<1x2x8x1024xf32>
      %15 = vector.shape_cast %14 : vector<1x2x8x1024xf32> to vector<2x8x1024xf32>
      %cst_15 = arith.constant dense<0.000000e+00> : vector<2x1024xf32>
      %16 = vector.multi_reduction <add>, %15, %cst_15 [1] : vector<2x8x1024xf32> to vector<2x1024xf32>
      %c0_16 = arith.constant 0 : index
      %c0_17 = arith.constant 0 : index
      %17 = vector.load %arg6[%c0_16, %c0_17] : memref<2x1024xf32, #tpu.memory_space<vmem>>, vector<2x1024xf32>
      tpu.vector_store %arg6[%c0_16, %c0_17], %16 {strides = array<i32>} : memref<2x1024xf32, #tpu.memory_space<vmem>>, vector<2x1024xf32>,
    } else {
    }
    %c0 = arith.constant 0 : index
    %c0_1 = arith.constant 0 : index
    %3 = vector.load %arg6[%c0, %c0_1] : memref<2x1024xf32, #tpu.memory_space<vmem>>, vector<2x1024xf32>
    %c0_2 = arith.constant 0 : index
    %c0_3 = arith.constant 0 : index
    %c0_4 = arith.constant 0 : index
    %4 = vector.load %arg3[%c0_2, %c0_3, %c0_4] : memref<1x1024x512xbf16, #tpu.memory_space<vmem>>, vector<1x1024x512xbf16>
    %5 = vector.shape_cast %4 : vector<1x1024x512xbf16> to vector<1024x512xbf16>
    %6 = arith.extf %5 : vector<1024x512xbf16> to vector<1024x512xf32>
    %cst = arith.constant dense<0.000000e+00> : vector<2x512xf32>
    %7 = tpu.matmul %3, %6, %cst {dimension_numbers = #tpu.dot_dimension_numbers<[1], [0], [0], [1], [0, 0, 1, 1], [], []>} : vector<2x1024xf32>, vector<1024x512xf32>, vector<2x512xf32> -> vector<2x512xf32>
    %c0_5 = arith.constant 0 : index
    %c0_6 = arith.constant 0 : index
    %c0_7 = arith.constant 0 : index
    %8 = vector.load %arg4[%c0_5, %c0_6, %c0_7] : memref<1x1x512xf32, #tpu.memory_space<vmem>>, vector<1x1x512xf32>
    %9 = vector.shape_cast %8 : vector<1x1x512xf32> to vector<1x512xf32>
    %10 = vector.broadcast %9 : vector<1x512xf32> to vector<2x512xf32>
    %11 = arith.addf %7, %10 : vector<2x512xf32>
    %12 = vector.shape_cast %11 : vector<2x512xf32> to vector<1x2x512xf32>
    %c0_8 = arith.constant 0 : index
    %c0_9 = arith.constant 0 : index
    %c0_10 = arith.constant 0 : index
    %13 = vector.load %arg5[%c0_8, %c0_9, %c0_10] : memref<1x2x512xf32, #tpu.memory_space<vmem>>, vector<1x2x512xf32>
    tpu.vector_store %arg5[%c0_8, %c0_9, %c0_10], %12 {strides = array<i32>} : memref<1x2x512xf32, #tpu.memory_space<vmem>>, vector<1x2x512xf32>,
    return
  }
  func.func @transform_0(%arg0: i32, %arg1: i32) -> (i32, i32, i32, i32) {
    %c0_i32 = arith.constant 0 : i32
    %c0_i32_0 = arith.constant 0 : i32
    %c0_i32_1 = arith.constant 0 : i32
    %c0_i32_2 = arith.constant 0 : i32
    return %arg0, %c0_i32, %c0_i32_0, %c0_i32_1 : i32, i32, i32, i32
  }
  func.func @transform_1(%arg0: i32, %arg1: i32) -> (i32, i32, i32) {
    %c0_i32 = arith.constant 0 : i32
    %c0_i32_0 = arith.constant 0 : i32
    return %arg0, %c0_i32, %arg1 : i32, i32, i32
  }
  func.func @transform_2(%arg0: i32, %arg1: i32) -> (i32, i32, i32) {
    %c0_i32 = arith.constant 0 : i32
    %c0_i32_0 = arith.constant 0 : i32
    return %arg0, %c0_i32, %arg1 : i32, i32, i32
  }
  func.func @transform_3(%arg0: i32, %arg1: i32) -> (i32, i32, i32) {
    %c0_i32 = arith.constant 0 : i32
    %c0_i32_0 = arith.constant 0 : i32
    return %arg0, %c0_i32, %arg1 : i32, i32, i32
  }
}

</mosaic_0001>

<bundles_post_ra>
// kernel: tpu_custom_call.1
= control target key start
LH: loop header
LB: loop body
LE: loop exit
PB: predicated region body
PF: predicated region fallthrough
CT: control target
= control target key end

     0   :  { %s4343_s0 = inlined_call_operand.hbm [shape: f32[2,2,8,1024], index: 0, kind: input, shape index: {}]   ;;  %s4344_s1 = inlined_call_operand.hbm [shape: bf16[2,1024,1024], index: 1, kind: input, shape index: {}]   ;;  %s4345_s2 = inlined_call_operand.hbm [shape: f32[2,1,1024], index: 2, kind: input, shape index: {}]   ;;  %s4346_s3 = inlined_call_operand.hbm [shape: f32[2,2,1024], index: 3, kind: output, shape index: {}]  }
   0x1   :  { %4367 = sst [smem:[#allocation23_spill]] %s4343_s0 }
   0x2   :  { %4368 = sst [smem:[#allocation24_spill]] %s4344_s1 }
   0x3   :  { %4369 = sst [smem:[#allocation25_spill]] %s4346_s3 }
   0x4   :  { %8 = vsyncpa [#allocation4], 0 }
   0x5   :  { %10 = vsyncpa [#allocation4 + $0x1], 0 }
   0x6   :  { %11 = vsyncpa [#allocation7], 0 }
   0x7   :  { %13 = vsyncpa [#allocation7 + $0x1], 0 }
   0x8   :  { %14 = vsyncpa [#allocation5], 0 }
   0x9   :  { %16 = vsyncpa [#allocation5 + $0x1], 0  ;;  %s3656_s12 = smov 0   ;;  %s3658_s13 = smov 0  }
   0xa   :  { %s3660_s14 = smov 0   ;;  %s3662_s15 = smov 0  }
   0xb   :  { %s3664_s16 = smov 0   ;;  %s3666_s17 = smov 0  }
   0xc   :  { %s3668_s18 = smov 0   ;;  %s3670_s19 = smov 0  }
   0xd   :  { %s3672_s20 = smov 0   ;;  %s3674_s21 = smov 0  }
   0xe   :  { %s3676_s22 = smov 0  }
   0xf LB: > { %4370 = sst [smem:[#allocation13_spill]] %s3583_s12  ;;  %s3712_s23 = sadd.s32 4294967295, %s3623_s22   ;;  %s3623_s22 = sphi %s3676_s22, %s22_s22   ;;  %s3619_s21 = sphi %s3674_s21, %s4422_s21   ;;  %s3615_s20 = sphi %s3672_s20, %s4421_s20   ;;  %s3611_s19 = sphi %s3670_s19, %s4420_s19   ;;  %s3607_s18 = sphi %s3668_s18, %s4419_s18   ;;  %s3603_s17 = sphi %s3666_s17, %s4412_s17   ;;  %s3599_s16 = sphi %s3664_s16, %s4418_s16   ;;  %s3595_s15 = sphi %s3662_s15, %s4417_s15   ;;  %s3591_s14 = sphi %s3660_s14, %s4410_s14   ;;  %s3587_s13 = sphi %s3658_s13, %s4416_s13   ;;  %s3583_s12 = sphi %s3656_s12, %s4415_s12  }
  0x10   : > { %4371 = sst [smem:[#allocation14_spill]] %s3591_s14  ;;  %s2091_s24 = sadd.s32 4294967294, %s3623_s22  }
  0x11   : > { %4372 = sst [smem:[#allocation15_spill]] %s3603_s17  ;;  %s31_s25 = sadd.s32 1, %s3615_s20 }
  0x12   : > { %4373 = sst [smem:[#allocation16_spill]] %s3623_s22  ;;  %s34_s26 = sadd.s32 1, %s3619_s21 }
  0x13   : > { %p32_p0 = scmp.ge.s32.totalorder %s31_s25, 2  ;;  %p4354_p1 = scmp.eq.s32.totalorder %s3623_s22, 0 }
  0x14   : > { %s69_s27 = sadd.s32 1, %s3591_s14  ;;  %p76_p2 = scmp.ne.s32.totalorder %s3591_s14, %s3587_s13 }
  0x15   : > { %s4424_s25 = smov (%p32_p0, %s31_s25), 0  ;;  %s4426_s26 = smov (!%p32_p0, %s34_s26), %s3619_s21 }
  0x16   : > { %4374 = sst [smem:[#allocation17_spill]] %s4424_s25  ;;  %s65_s28 = ssub.s32 %s3615_s20, %s4424_s25 }
  0x17   : > { %p3728_p3 = por %p76_p2, %p4354_p1  ;;  %p36_p4 = scmp.ge.s32.totalorder %s4426_s26, 2 }
  0x18   : > { %p4353_p5 = scmp.ne.s32.totalorder %s3587_s13, %s3583_s12  ;;  %p136_p6 = scmp.eq.s32.totalorder %s3712_s23, 3 }
  0x19   : > { %p142_p7 = scmp.eq.s32.totalorder %s2091_s24, 3  ;;  %s4428_s26 = smov (%p36_p4, %s4426_s26), 0 }
  0x1a   : > { %4376 = sst [smem:[#allocation18_spill]] %s4428_s26  ;;  %p3737_p8 = por %p136_p6, %p76_p2 }
  0x1b   : > { %p3744_p9 = por %p142_p7, %p4353_p5  ;;  %s3750_s5 = ssub.s32 %s3619_s21, %s4428_s26 }
  0x1c   : > { %s4377_s30 = scalar_select %p3737_p8, 1, 0 }
  0x1d   : > { %s4379_s4 = scalar_select %p3744_p9, 1, 0 }
  0x1e   : > { %4378 = sst [smem:[#allocation19_spill]] %s4377_s30  ;;  %s66_s6 = sor.u32 %s65_s28, %s3750_s5 }
  0x1f   : > { %4380 = sst [smem:[#allocation20_spill]] %s4379_s4  ;;  %p67_p11 = scmp.eq.s32.totalorder %s66_s6, 0 }
  0x20   : > { %p4352_p12 = scmp.lt.s32.totalorder %s3623_s22, 4  ;;  %s183_s7 = sand.u32 1, %s3623_s22  }
  0x21   : > { %s4351_s8 = sand.u32 1, %s3591_s14   ;;  %s4355_s11 = sshll.u32 %s3615_s20, 2 }
  0x22   : > { %s3758_s9 = scalar_select %p67_p11, %s3591_s14, %s69_s27  }
  0x23   : > { %s2097_s10 = sshll.u32 %s4351_s8, 11  ;;  %s2099_s24 = sshll.u32 %s3619_s21, 10 }
  0x24   : > { %4381 = sst [smem:[#allocation21_spill]] %s3758_s9  ;;  %s187_s25 = scalar_lea.vmem [#allocation6], %s2097_s10 }
  0x25   : > { %s196_s26 = sshll.u32 %s187_s25, 4  ;;  %s193_s4 = sadd.s32 %s2099_s24, %s4355_s11  ;;  %s3766_s26 = int_to_ptr.vmem [resolvable:$true] %s196_s26 }
  0x26   : > { %s2100_s3 = sshll.u32 %s193_s4, 6  ;;  %p3772_p13 = pnand %p4352_p12, %p3728_p3 }
  0x27   : > { %s4383_s1 = sld [smem:[#allocation24_spill]]  ;;  %s3782_s25 = scalar_lea.sflag [#allocation7], %s183_s7 }
  0x28   : > { %p4357_p3 = pneg %p3772_p13 }
  0x2d   : > { %s3779_s8 = scalar_lea.hbm %s4383_s1, %s2100_s3  ;;  %s3412_s3 = scalar_lea.hbm %s4383_s1, 131072 }
  0x2e   : > { %s3407_s29 = scalar_lea.hbm %s3779_s8, 32768  ;;  %p3413_p7 = scmp.lt.u32.totalorder %s3779_s8, %s4383_s1 }
  0x2f   : > { %p3408_p2 = scmp.ne.s32.totalorder %s3779_s8, %s3407_s29  ;;  %p3414_p11 = scmp.lt.u32.totalorder %s3412_s3, %s3407_s29 }
  0x30   : > { %p3416_p5 = scmp.lt.u32.totalorder %s3407_s29, %s3779_s8 }
  0x31   : > { %p3410_p4 = pnand %p4357_p3, %p3408_p2  ;;  %p3415_p12 = por %p3414_p11, %p3413_p7 }
  0x33   : > { %p3411_p6 = pneg %p3410_p4  ;;  %p3417_p1 = por %p3416_p5, %p3415_p12 }
  0x35   : > { %p3418_p10 = pnand %p3417_p1, %p3411_p6 }
  0x37   : > { %3421 = shalt.err (!%p3418_p10)
}
  0x38   : > { %s3422_s7 = scalar_lea.vmem %s3766_s26, 32768  ;;  %s3625_s27 = smov [#allocation6]  }
  0x39   : > { %p3423_p2 = scmp.ne.s32.totalorder %s3766_s26, %s3422_s7  ;;  %s3427_s4 = sshll.u32 %s3625_s27, 4  ;;  %s3428_s4 = int_to_ptr.vmem [resolvable:$false] %s3427_s4 }
  0x3a   : > { %s3429_s10 = scalar_lea.vmem %s3428_s4, 65536  ;;  %p3430_p9 = scmp.lt.s32.totalorder %s3766_s26, %s3428_s4 }
  0x3b   : > { %p3425_p4 = pnand %p3423_p2, %p4357_p3  ;;  %p3431_p7 = scmp.lt.s32.totalorder %s3429_s10, %s3422_s7 }
  0x3d   : > { %p3426_p0 = pneg %p3425_p4  ;;  %p3432_p11 = por %p3431_p7, %p3430_p9 }
  0x3f   : > { %p3433_p5 = pnand %p3432_p11, %p3426_p0 }
  0x41   : > { %3436 = shalt.err (!%p3433_p5)
}
  0x42   : > { %s3626_s29 = smov 512   ;;  %s3627_s3 = smov 256  }
  0x43   : > { %s3628_s24 = smov 16   ;;  %p225_p1 = scmp.lt.s32.totalorder %s3623_s22, 5 }
  0x44   : > { %2916 = dma.hbm_to_vmem [thread:$0]  (!%p3772_p13), %s3779_s8, 32768, %s3766_s26, %s3782_s25, %s3626_s29, %s3627_s3, %s3628_s24  }
  0x45   : > { %p4384_p9 = scmp.ge.s32.totalorder %s3623_s22, 1  ;;  %s41_s7 = sadd.s32 1, %s3603_s17 }
  0x46   : > { %p48_p12 = scmp.ne.s32.totalorder %s3603_s17, %s3599_s16  ;;  %p4386_p0 = scmp.eq.s32.totalorder %s3750_s5, 0 }
  0x47   : > { %p3813_p10 = pnand %p4384_p9, %p225_p1  ;;  %p4388_p6 = scmp.eq.s32.totalorder %s3623_s22, 0 }
  0x48   : > { %s3823_s27 = scalar_select %p4386_p0, %s3603_s17, %s41_s7  }
  0x49   : > { %s4385_s6 = scalar_select %p3813_p10, 1, 0 }
  0x4a   : > { %4387 = sst [smem:[#allocation22_spill]] %s3823_s27  ;;  %p50_p2 = por %p4388_p6, %p48_p12 }
  0x4b   : > { %p54_p4 = scmp.ne.s32.totalorder %s3599_s16, %s3595_s15  ;;  %p55_p7 = scmp.eq.s32.totalorder %s3712_s23, 0 }
  0x4c   : > { %s162_s4 = sand.u32 1, %s3603_s17   ;;  %p4390_p5 = scmp.ne.s32.totalorder %s3587_s13, %s3583_s12 }
  0x4d   : > { %s2094_s10 = sshll.u32 %s162_s4, 7  ;;  %p3831_p11 = por %p55_p7, %p54_p4 }
  0x4e   : > { %p3838_p1 = por %p4390_p5, %p55_p7  ;;  %s2117_s29 = sshll.u32 %s3619_s21, 11 }
  0x4f   : > { %s4389_s26 = scalar_select %p3831_p11, 1, 0 }
  0x50   : > { %s4391_s8 = scalar_select %p3838_p1, 1, 0 }
  0x51   : > { %s4392_s0 = sld [smem:[#allocation23_spill]]  ;;  %s166_s15 = scalar_lea.vmem [#allocation3], %s2094_s10 }
  0x52   : > { %s173_s7 = sshll.u32 %s166_s15, 4  ;;  %p4393_p9 = scmp.lt.s32.totalorder %s3623_s22, 4  ;;  %s3848_s7 = int_to_ptr.vmem [resolvable:$true] %s173_s7 }
  0x53   : > { %s4395_s1 = sand.u32 1, %s3591_s14  }
  0x54   : > { %p3852_p12 = pnand %p4393_p9, %p50_p2  ;;  %s3858_s27 = sshll.u32 %s4395_s1, 2 }
  0x56   : > { %p3439_p6 = pneg %p3852_p12 }
  0x57   : > { %s3846_s24 = scalar_lea.hbm %s4392_s0, %s2117_s29  ;;  %s3860_s29 = scalar_lea.sflag [#allocation4], %s162_s4 }
  0x58   : > { %s3437_s3 = scalar_lea.hbm %s3846_s24, 2048  ;;  %s3442_s15 = scalar_lea.hbm %s4392_s0, 4096 }
  0x59   : > { %p3438_p0 = scmp.ne.s32.totalorder %s3846_s24, %s3437_s3  ;;  %p3443_p2 = scmp.lt.u32.totalorder %s3846_s24, %s4392_s0 }
  0x5a   : > { %p3444_p5 = scmp.lt.u32.totalorder %s3442_s15, %s3437_s3  ;;  %p3446_p3 = scmp.lt.u32.totalorder %s3437_s3, %s3846_s24 }
  0x5b   : > { %p3440_p4 = pnand %p3439_p6, %p3438_p0 }
  0x5c   : > { %p3445_p9 = por %p3444_p5, %p3443_p2 }
  0x5d   : > { %p3441_p7 = pneg %p3440_p4 }
  0x5e   : > { %p3447_p8 = por %p3446_p3, %p3445_p9 }
  0x60   : > { %p3448_p1 = pnand %p3447_p8, %p3441_p7 }
  0x62   : > { %3451 = shalt.err (!%p3448_p1)
}
  0x63   : > { %s3452_s1 = scalar_lea.vmem %s3848_s7, 2048  ;;  %s3629_s4 = smov [#allocation3]  }
  0x64   : > { %p3453_p0 = scmp.ne.s32.totalorder %s3848_s7, %s3452_s1  ;;  %s3457_s10 = sshll.u32 %s3629_s4, 4  ;;  %s3458_s10 = int_to_ptr.vmem [resolvable:$false] %s3457_s10 }
  0x65   : > { %s3459_s17 = scalar_lea.vmem %s3458_s10, 4096  ;;  %p3460_p10 = scmp.lt.s32.totalorder %s3848_s7, %s3458_s10 }
  0x66   : > { %p3455_p4 = pnand %p3453_p0, %p3439_p6  ;;  %p3461_p2 = scmp.lt.s32.totalorder %s3459_s17, %s3452_s1 }
  0x68   : > { %p3456_p11 = pneg %p3455_p4  ;;  %p3462_p5 = por %p3461_p2, %p3460_p10 }
  0x6a   : > { %p3463_p3 = pnand %p3462_p5, %p3456_p11 }
  0x6c   : > { %3466 = shalt.err (!%p3463_p3)
}
  0x6d   : > { %s3630_s9 = smov 1024   ;;  %s3631_s3 = smov 64  }
  0x6e   : > { %2913 = dma.hbm_to_vmem [thread:$0]  (!%p3852_p12), %s3846_s24, 2048, %s3848_s7, %s3860_s29, %s3630_s9, %s3630_s9, %s3631_s3  }
  0x6f   : > { %s2103_s5 = sshll.u32 %s3619_s21, 3  ;;  %s4396_s15 = sshll.u32 %s3615_s20, 2 }
  0x70   : > { %s216_s4 = sadd.s32 %s2103_s5, %s4396_s15  ;;  %s210_s10 = scalar_lea.vmem [#allocation8], %s3858_s27 }
  0x71   : > { %s220_s1 = sshll.u32 %s210_s10, 4  ;;  %s2104_s17 = sshll.u32 %s216_s4, 4  ;;  %s221_s1 = int_to_ptr.vmem [resolvable:$true] %s220_s1 }
  0x72   : > { %s218_s12 = scalar_lea.hbm %s4345_s2, %s2104_s17  ;;  %p4397_p10 = pneg %p3772_p13 }
  0x73   : > { %s3467_s22 = scalar_lea.hbm %s218_s12, 64  ;;  %s3472_s24 = scalar_lea.hbm %s4345_s2, 256 }
  0x74   : > { %p3468_p8 = scmp.ne.s32.totalorder %s218_s12, %s3467_s22  ;;  %p3473_p12 = scmp.lt.u32.totalorder %s218_s12, %s4345_s2 }
  0x75   : > { %p3474_p6 = scmp.lt.u32.totalorder %s3472_s24, %s3467_s22  ;;  %p3476_p9 = scmp.lt.u32.totalorder %s3467_s22, %s218_s12 }
  0x76   : > { %p3470_p11 = pnand %p3468_p8, %p4397_p10 }
  0x77   : > { %p3475_p7 = por %p3474_p6, %p3473_p12 }
  0x78   : > { %p3471_p1 = pneg %p3470_p11 }
  0x79   : > { %p3477_p0 = por %p3476_p9, %p3475_p7 }
  0x7b   : > { %p3478_p4 = pnand %p3477_p0, %p3471_p1 }
  0x7d   : > { %3481 = shalt.err (!%p3478_p4)
}
  0x7e   : > { %s3482_s0 = scalar_lea.vmem %s221_s1, 64  ;;  %p4398_p5 = pmov %p4397_p10 }
  0x7f   : > { %p3483_p2 = scmp.ne.s32.totalorder %s221_s1, %s3482_s0  ;;  %s3632_s14 = smov [#allocation8]  }
  0x80   : > { %s3487_s30 = sshll.u32 %s3632_s14, 4  ;;  %s3488_s30 = int_to_ptr.vmem [resolvable:$false] %s3487_s30 }
  0x81   : > { %p3485_p3 = pnand %p3483_p2, %p4398_p5  ;;  %s3489_s27 = scalar_lea.vmem %s3488_s30, 128 }
  0x82   : > { %p3490_p10 = scmp.lt.s32.totalorder %s221_s1, %s3488_s30  ;;  %p3491_p11 = scmp.lt.s32.totalorder %s3489_s27, %s3482_s0 }
  0x83   : > { %p3486_p8 = pneg %p3485_p3 }
  0x84   : > { %p3492_p6 = por %p3491_p11, %p3490_p10 }
  0x86   : > { %p3493_p12 = pnand %p3492_p6, %p3486_p8 }
  0x88   : > { %3496 = shalt.err (!%p3493_p12)
}
  0x89   : > { %2919 = dma.hbm_to_vmem [thread:$0]  (!%p3772_p13), %s218_s12, 64, %s221_s1, %s3782_s25  }
  0x8a   : > { %p4399_p1 = scmp.ne.s32.totalorder %s4385_s6, 0 }
  0x8b   : > { %s231_s22 = sand.u32 (!%p4399_p1), 1, %s3599_s16   ;;  %p4400_p7 = scmp.ne.s32.totalorder (!%p4399_p1), %s4389_s26, 0 }
  0x8c   : > { %229 = sbr.rel (%p4399_p1) target bundleno = 690 (0x2b2), region = 32  ;;  %s2106_s9 = sshll.u32 (!%p4399_p1), %s231_s22, 7 }
  0x8d   : > { %s232_s3 = scalar_lea.sflag (!%p4399_p1), [#allocation4], %s231_s22  ;;  %s3913_s5 = scalar_lea.vmem (!%p4399_p1), [#allocation3], %s2106_s9 }
  0x93   : > { %3570 = dma.done.wait (%p4400_p7), %s232_s3, 2048  }
  0x94   : > { %3572 = vsyncadd (%p4400_p7), %s232_s3, 4294965248  ;;  %s240_s28 = sand.u32 1, %s3712_s23   ;;  %s3921_s12 = sand.u32 1, %s3587_s13  }
  0x95   : > { %s2107_s25 = sshll.u32 %s3921_s12, 11  ;;  %s241_s6 = scalar_lea.sflag [#allocation7], %s240_s28 }
  0x96   : > { %s3924_s15 = scalar_lea.vmem [#allocation6], %s2107_s25  ;;  %p4401_p13 = scmp.ne.s32.totalorder %s4391_s8, 0 }
  0x98   : > { %3574 = dma.done.wait (%p4401_p13), %s241_s6, 32832  }
  0x99   : > { %3576 = vsyncadd (%p4401_p13), %s241_s6, 4294934464  ;;  %s2108_s26 = sshll.u32 %s3921_s12, 2  ;;  %s2109_s4 = sshll.u32 %s3921_s12, 3 }
  0x9a   : > { %s3932_s10 = scalar_lea.vmem [#allocation8], %s2108_s26  ;;  %s3934_s1 = scalar_lea.vmem [#allocation9], %s2109_s4 }
  0x9b   : > { %p2110_p9 = scmp.ne.s32.totalorder %s3607_s18, 0 }
  0x9c   : > { %v293_v0 = vld [vmem:[%s3913_s5] sm:$0xff] (!%p2110_p9)  ;;  %v294_v1 = vld [vmem:[%s3913_s5 + $0x8] sm:$0xff] (!%p2110_p9)  ;;  %v295_v2 = vld [vmem:[%s3913_s5 + $0x10] sm:$0xff] (!%p2110_p9)  ;;  %v426_v9 = vlaneseq (!%p2110_p9)  ;;  %v3633_v15 = vmov (!%p2110_p9), 1983009808   ;;  %vm494_vm0 = vcmask (!%p2110_p9), 1041409  }
  0x9d   : > { %292 = sbr.rel (%p2110_p9) target bundleno = 198 (0xc6), region = 48  ;;  %v296_v3 = vld [vmem:[%s3913_s5 + $0x18] sm:$0xff] (!%p2110_p9)  ;;  %v297_v4 = vld [vmem:[%s3913_s5 + $0x20] sm:$0xff] (!%p2110_p9)  ;;  %v298_v5 = vld [vmem:[%s3913_s5 + $0x28] sm:$0xff] (!%p2110_p9)  ;;  %v309_v6 = vrot.slane (!%p2110_p9), %v293_v0, 4  ;;  %v315_v7 = vrot.slane (!%p2110_p9), %v294_v1, 4  ;;  %v3945_v16 = vunpack.c.l.s4 (!%p2110_p9), %v3633_v15 }
  0x9e   : > { %v321_v8 = vrot.slane (!%p2110_p9), %v295_v2, 4  ;;  %v299_v10 = vld [vmem:[%s3913_s5 + $0x30] sm:$0xff] (!%p2110_p9)  ;;  %v300_v11 = vld [vmem:[%s3913_s5 + $0x38] sm:$0xff] (!%p2110_p9)  ;;  %v327_v12 = vrot.slane (!%p2110_p9), %v296_v3, 4  ;;  %v333_v13 = vrot.slane (!%p2110_p9), %v297_v4, 4  ;;  %v339_v14 = vrot.slane (!%p2110_p9), %v298_v5, 4 }
  0x9f   : > { %v310_v17 = vadd.f32 (!%p2110_p9), %v309_v6, %v293_v0  ;;  %v316_v18 = vadd.f32 (!%p2110_p9), %v315_v7, %v294_v1  ;;  %v345_v20 = vrot.slane (!%p2110_p9), %v299_v10, 4  ;;  %v351_v24 = vrot.slane (!%p2110_p9), %v300_v11, 4  ;;  %v301_v45 = vld [vmem:[%s3913_s5 + $0x40] sm:$0xff] (!%p2110_p9)  ;;  %v302_v46 = vld [vmem:[%s3913_s5 + $0x48] sm:$0xff] (!%p2110_p9)  ;;  %v303_v47 = vld [vmem:[%s3913_s5 + $0x50] sm:$0xff] (!%p2110_p9) }
  0xa0   : > { %v322_v19 = vadd.f32 (!%p2110_p9), %v321_v8, %v295_v2  ;;  %v328_v21 = vadd.f32 (!%p2110_p9), %v327_v12, %v296_v3  ;;  %v334_v22 = vadd.f32 (!%p2110_p9), %v333_v13, %v297_v4  ;;  %v340_v23 = vadd.f32 (!%p2110_p9), %v339_v14, %v298_v5  ;;  %v304_v52 = vld [vmem:[%s3913_s5 + $0x58] sm:$0xff] (!%p2110_p9)  ;;  %v305_v53 = vld [vmem:[%s3913_s5 + $0x60] sm:$0xff] (!%p2110_p9)  ;;  %v306_v54 = vld [vmem:[%s3913_s5 + $0x68] sm:$0xff] (!%p2110_p9) }
  0xa1   : > { %v311_v25 = vrot.slane (!%p2110_p9), %v310_v17, 2  ;;  %v317_v26 = vrot.slane (!%p2110_p9), %v316_v18, 2  ;;  %v346_v28 = vadd.f32 (!%p2110_p9), %v345_v20, %v299_v10  ;;  %v352_v32 = vadd.f32 (!%p2110_p9), %v351_v24, %v300_v11  ;;  %v307_v59 = vld [vmem:[%s3913_s5 + $0x70] sm:$0xff] (!%p2110_p9)  ;;  %v308_v0 = vld [vmem:[%s3913_s5 + $0x78] sm:$0xff] (!%p2110_p9) }
  0xa2   : > { %v323_v27 = vrot.slane (!%p2110_p9), %v322_v19, 2  ;;  %v329_v29 = vrot.slane (!%p2110_p9), %v328_v21, 2  ;;  %v335_v30 = vrot.slane (!%p2110_p9), %v334_v22, 2  ;;  %v341_v31 = vrot.slane (!%p2110_p9), %v340_v23, 2 }
  0xa3   : > { %v312_v33 = vadd.f32 (!%p2110_p9), %v311_v25, %v310_v17  ;;  %v318_v34 = vadd.f32 (!%p2110_p9), %v317_v26, %v316_v18  ;;  %v347_v36 = vrot.slane (!%p2110_p9), %v346_v28, 2  ;;  %v353_v40 = vrot.slane (!%p2110_p9), %v352_v32, 2 }
  0xa4   : > { %v324_v35 = vadd.f32 %v323_v27, %v322_v19  ;;  %v330_v37 = vadd.f32 %v329_v29, %v328_v21  ;;  %v336_v38 = vadd.f32 %v335_v30, %v334_v22  ;;  %v342_v39 = vadd.f32 %v341_v31, %v340_v23 }
  0xa5   : > { %v313_v41 = vrot.slane %v312_v33, 1  ;;  %v319_v42 = vrot.slane %v318_v34, 1  ;;  %v348_v44 = vadd.f32 %v347_v36, %v346_v28  ;;  %v354_v51 = vadd.f32 %v353_v40, %v352_v32 }
  0xa6   : > { %v325_v43 = vrot.slane %v324_v35, 1  ;;  %v331_v48 = vrot.slane %v330_v37, 1  ;;  %v337_v49 = vrot.slane %v336_v38, 1  ;;  %v343_v50 = vrot.slane %v342_v39, 1 }
  0xa7   : > { %v3953_v55 = vadd.f32 %v313_v41, %v312_v33  ;;  %v3955_v56 = vadd.f32 %v319_v42, %v318_v34  ;;  %v349_v58 = vrot.slane %v348_v44, 1  ;;  %v355_v63 = vrot.slane %v354_v51, 1 }
  0xa8   : > { %v3957_v57 = vadd.f32 %v325_v43, %v324_v35  ;;  %v3960_v60 = vadd.f32 %v331_v48, %v330_v37  ;;  %v3962_v61 = vadd.f32 %v337_v49, %v336_v38  ;;  %v3964_v62 = vadd.f32 %v343_v50, %v342_v39 }
  0xa9   : > { %v3967_v1 = vadd.f32 %v349_v58, %v348_v44  ;;  %v357_v2 = vrot.slane %v301_v45, 4  ;;  %v363_v3 = vrot.slane %v302_v46, 4  ;;  %v369_v4 = vrot.slane %v303_v47, 4 }
  0xaa   : > { %v356_v5 = vadd.f32 %v355_v63, %v354_v51  ;;  %v375_v6 = vrot.slane %v304_v52, 4  ;;  %v381_v7 = vrot.slane %v305_v53, 4  ;;  %v387_v8 = vrot.slane %v306_v54, 4 }
  0xab   : > { %v358_v10 = vadd.f32 %v357_v2, %v301_v45  ;;  %v364_v11 = vadd.f32 %v363_v3, %v302_v46  ;;  %v370_v12 = vadd.f32 %v369_v4, %v303_v47  ;;  %v393_v13 = vrot.slane %v307_v59, 4 }
  0xac   : > { %v376_v14 = vadd.f32 %v375_v6, %v304_v52  ;;  %v382_v15 = vadd.f32 %v381_v7, %v305_v53  ;;  %v388_v17 = vadd.f32 %v387_v8, %v306_v54  ;;  %v399_v18 = vrot.slane %v308_v0, 4 }
  0xad   : > { %v359_v19 = vrot.slane %v358_v10, 2  ;;  %v365_v20 = vrot.slane %v364_v11, 2  ;;  %v371_v21 = vrot.slane %v370_v12, 2  ;;  %v394_v22 = vadd.f32 %v393_v13, %v307_v59 }
  0xae   : > { %v377_v23 = vrot.slane %v376_v14, 2  ;;  %v383_v24 = vrot.slane %v382_v15, 2  ;;  %v389_v25 = vrot.slane %v388_v17, 2  ;;  %v400_v26 = vadd.f32 %v399_v18, %v308_v0 }
  0xaf   : > { %v360_v27 = vadd.f32 %v359_v19, %v358_v10  ;;  %v366_v28 = vadd.f32 %v365_v20, %v364_v11  ;;  %v372_v29 = vadd.f32 %v371_v21, %v370_v12  ;;  %v395_v30 = vrot.slane %v394_v22, 2 }
  0xb0   : > { %v378_v31 = vadd.f32 %v377_v23, %v376_v14  ;;  %v384_v32 = vadd.f32 %v383_v24, %v382_v15  ;;  %v390_v33 = vadd.f32 %v389_v25, %v388_v17  ;;  %v401_v34 = vrot.slane %v400_v26, 2 }
  0xb1   : > { %v361_v35 = vrot.slane %v360_v27, 1  ;;  %v367_v36 = vrot.slane %v366_v28, 1  ;;  %v373_v37 = vrot.slane %v372_v29, 1  ;;  %v396_v38 = vadd.f32 %v395_v30, %v394_v22 }
  0xb2   : > { %v379_v39 = vrot.slane %v378_v31, 1  ;;  %v385_v40 = vrot.slane %v384_v32, 1  ;;  %v391_v41 = vrot.slane %v390_v33, 1  ;;  %v402_v42 = vadd.f32 %v401_v34, %v400_v26 }
  0xb3   : > { %v362_v43 = vadd.f32 %v361_v35, %v360_v27  ;;  %v368_v44 = vadd.f32 %v367_v36, %v366_v28  ;;  %v374_v45 = vadd.f32 %v373_v37, %v372_v29  ;;  %v397_v46 = vrot.slane %v396_v38, 1 }
  0xb4   : > { %v380_v47 = vadd.f32 %v379_v39, %v378_v31  ;;  %v386_v48 = vadd.f32 %v385_v40, %v384_v32  ;;  %v392_v49 = vadd.f32 %v391_v41, %v390_v33  ;;  %v403_v50 = vrot.slane %v402_v42, 1 }
  0xb5   : > { %v398_v51 = vadd.f32 %v397_v46, %v396_v38  ;;  %v421_v52 = vcombine.low %v3953_v55, %v3955_v56  ;;  %v422_v53 = vcombine.low %v3957_v57, %v3960_v60  ;;  %v425_v54 = vunpack.c.0.s8 %v3945_v16 }
  0xb6   : > { %v404_v58 = vadd.f32 %v403_v50, %v402_v42  ;;  %v427_v59 = vshrl.u32 %v426_v9, 7  ;;  %v438_v63 = vcombine.low %v3962_v61, %v3964_v62  ;;  %v439_v0 = vcombine.low %v3967_v1, %v356_v5 }
  0xb7   : > { %v455_v2 = vcombine.low %v362_v43, %v368_v44  ;;  %v456_v3 = vcombine.low %v374_v45, %v380_v47  ;;  %v472_v4 = vcombine.low %v386_v48, %v392_v49  ;;  %vm496_vm1 = vcmask 1043459  }
  0xb8   : > { %v428_v6 = vsub.s32 %v425_v54, %v427_v59  ;;  %v473_v7 = vcombine.low %v398_v51, %v404_v58  ;;  %vm498_vm2 = vcmask 1045509   ;;  %vm500_vm3 = vcmask 1047559  }
  0xba   : > { %v429_v8 = vrot.slane %v421_v52, %v428_v6  ;;  %v436_v55 = vrot.slane %v422_v53, %v428_v6  ;;  %v446_v56 = vrot.slane %v438_v63, %v428_v6  ;;  %v453_v10 = vrot.slane %v439_v0, %v428_v6 }
  0xbb   : > { %v463_v57 = vrot.slane %v455_v2, %v428_v6  ;;  %v470_v60 = vrot.slane %v456_v3, %v428_v6  ;;  %v480_v16 = vrot.slane %v472_v4, %v428_v6  ;;  %v487_v11 = vrot.slane %v473_v7, %v428_v6 }
  0xbc   : > { %v437_v12 = vcombine.low %v429_v8, %v436_v55  ;;  %v454_v9 = vcombine.low %v446_v56, %v453_v10 }
  0xbd   : > { %v471_v13 = vcombine.low %v463_v57, %v470_v60  ;;  %v488_v14 = vcombine.low %v480_v16, %v487_v11 }
  0xbf   : > { %v493_v61 = vrot.slane %v471_v13, 7  ;;  %v504_v62 = vrot.slane %v488_v14, 7 }
  0xc1   : > { %v495_v1 = vsel %vm494_vm0, %v493_v61, %v437_v12  ;;  %v505_v5 = vsel %vm494_vm0, %v504_v62, %v454_v9 }
  0xc2   : > { %v497_v15 = vsel %vm496_vm1, %v493_v61, %v495_v1  ;;  %v506_v17 = vsel %vm496_vm1, %v504_v62, %v505_v5 }
  0xc3   : > { %v499_v18 = vsel %vm498_vm2, %v493_v61, %v497_v15  ;;  %v507_v19 = vsel %vm498_vm2, %v504_v62, %v506_v17 }
  0xc4   : > { %v501_v20 = vsel %vm500_vm3, %v493_v61, %v499_v18  ;;  %v508_v21 = vsel %vm500_vm3, %v504_v62, %v507_v19 }
  0xc5   : > { %511 = vst [vmem:[#allocation2] sm:$0xff] %v501_v20  ;;  %512 = vst [vmem:[#allocation2 + $0x8] sm:$0xff] %v508_v21 }
  0xc6 PF: > { %v3021_v22 = vld [vmem:[%s3924_s15 + $0x4] ss:$16 sps:$4 sm:$0xff]   ;;  %v3023_v23 = vld [vmem:[%s3924_s15 + $0xc] ss:$16 sps:$4 sm:$0xff]   ;;  %v3025_v24 = vld [vmem:[%s3924_s15] ss:$16 sps:$4 sm:$0xff]   ;;  %v1285_v0 = vlaneseq }
  0xc7   : > { %2119 = vmatprep.subr.bf16.mxu0 %v3021_v22  ;;  %v3026_v25 = vld [vmem:[%s3924_s15 + $0x8] ss:$16 sps:$4 sm:$0xff]   ;;  %2375 = vmatprep.subr.bf16.mxu1 %v3023_v23  ;;  %v3027_v26 = vld [vmem:[%s3924_s15 + $0x24] ss:$16 sps:$4 sm:$0xff]   ;;  %v3029_v27 = vld [vmem:[%s3924_s15 + $0x2c] ss:$16 sps:$4 sm:$0xff]  }
  0xc8   : > { %2121 = vmatpush1.bf16.msra.mxu0 %v3025_v24  ;;  %2377 = vmatpush1.bf16.msra.mxu1 %v3026_v25  ;;  %v3031_v28 = vld [vmem:[%s3924_s15 + $0x20] ss:$16 sps:$4 sm:$0xff]   ;;  %v3032_v29 = vld [vmem:[%s3924_s15 + $0x28] ss:$16 sps:$4 sm:$0xff]   ;;  %v3033_v30 = vld [vmem:[%s3924_s15 + $0x44] ss:$16 sps:$4 sm:$0xff]  }
  0xc9   : > { %2123 = vmatprep.subr.bf16.mxu0 %v3027_v26  ;;  %2379 = vmatprep.subr.bf16.mxu1 %v3029_v27  ;;  %v3035_v31 = vld [vmem:[%s3924_s15 + $0x4c] ss:$16 sps:$4 sm:$0xff]   ;;  %v3037_v32 = vld [vmem:[%s3924_s15 + $0x40] ss:$16 sps:$4 sm:$0xff]   ;;  %v3038_v33 = vld [vmem:[%s3924_s15 + $0x48] ss:$16 sps:$4 sm:$0xff]  }
  0xca   : > { %v3039_v34 = vld [vmem:[%s3924_s15 + $0x64] ss:$16 sps:$4 sm:$0xff]   ;;  %v3041_v35 = vld [vmem:[%s3924_s15 + $0x6c] ss:$16 sps:$4 sm:$0xff]   ;;  %v3043_v36 = vld [vmem:[%s3924_s15 + $0x60] ss:$16 sps:$4 sm:$0xff]  }
  0xcb   : > { %v3044_v37 = vld [vmem:[%s3924_s15 + $0x68] ss:$16 sps:$4 sm:$0xff]   ;;  %v3045_v38 = vld [vmem:[%s3924_s15 + $0x84] ss:$16 sps:$4 sm:$0xff]   ;;  %v3047_v39 = vld [vmem:[%s3924_s15 + $0x8c] ss:$16 sps:$4 sm:$0xff]  }
  0xcc   : > { %2125 = vmatpush1.bf16.msra.mxu0 %v3031_v28  ;;  %2381 = vmatpush1.bf16.msra.mxu1 %v3032_v29  ;;  %v3049_v40 = vld [vmem:[%s3924_s15 + $0x80] ss:$16 sps:$4 sm:$0xff]   ;;  %v3050_v41 = vld [vmem:[%s3924_s15 + $0x88] ss:$16 sps:$4 sm:$0xff]   ;;  %v3051_v42 = vld [vmem:[%s3924_s15 + $0xa4] ss:$16 sps:$4 sm:$0xff]  }
  0xcd   : > { %2127 = vmatprep.subr.bf16.mxu0 %v3033_v30  ;;  %2383 = vmatprep.subr.bf16.mxu1 %v3035_v31  ;;  %v3053_v43 = vld [vmem:[%s3924_s15 + $0xac] ss:$16 sps:$4 sm:$0xff]   ;;  %v3055_v44 = vld [vmem:[%s3924_s15 + $0xa0] ss:$16 sps:$4 sm:$0xff]   ;;  %v3056_v45 = vld [vmem:[%s3924_s15 + $0xa8] ss:$16 sps:$4 sm:$0xff]  }
  0xce   : > { %v3057_v46 = vld [vmem:[%s3924_s15 + $0xc4] ss:$16 sps:$4 sm:$0xff]   ;;  %v3059_v47 = vld [vmem:[%s3924_s15 + $0xcc] ss:$16 sps:$4 sm:$0xff]   ;;  %v3061_v48 = vld [vmem:[%s3924_s15 + $0xc0] ss:$16 sps:$4 sm:$0xff]  }
  0xcf   : > { %v3062_v49 = vld [vmem:[%s3924_s15 + $0xc8] ss:$16 sps:$4 sm:$0xff]   ;;  %v3063_v50 = vld [vmem:[%s3924_s15 + $0xe4] ss:$16 sps:$4 sm:$0xff]   ;;  %v3065_v51 = vld [vmem:[%s3924_s15 + $0xec] ss:$16 sps:$4 sm:$0xff]  }
  0xd0   : > { %2129 = vmatpush1.bf16.msra.mxu0 %v3037_v32  ;;  %2385 = vmatpush1.bf16.msra.mxu1 %v3038_v33  ;;  %v3067_v52 = vld [vmem:[%s3924_s15 + $0xe0] ss:$16 sps:$4 sm:$0xff]   ;;  %v3068_v53 = vld [vmem:[%s3924_s15 + $0xe8] ss:$16 sps:$4 sm:$0xff]   ;;  %v3069_v54 = vld [vmem:[%s3924_s15 + $0x104] ss:$16 sps:$4 sm:$0xff]  }
  0xd1   : > { %2131 = vmatprep.subr.bf16.mxu0 %v3039_v34  ;;  %2387 = vmatprep.subr.bf16.mxu1 %v3041_v35  ;;  %v3071_v58 = vld [vmem:[%s3924_s15 + $0x10c] ss:$16 sps:$4 sm:$0xff]   ;;  %v3073_v59 = vld [vmem:[%s3924_s15 + $0x100] ss:$16 sps:$4 sm:$0xff]   ;;  %v3074_v63 = vld [vmem:[%s3924_s15 + $0x108] ss:$16 sps:$4 sm:$0xff]  }
  0xd2   : > { %v3634_v2 = vmov 1983009808   ;;  %v3075_v4 = vld [vmem:[%s3924_s15 + $0x124] ss:$16 sps:$4 sm:$0xff]   ;;  %v3077_v6 = vld [vmem:[%s3924_s15 + $0x12c] ss:$16 sps:$4 sm:$0xff]  }
  0xd3   : > { %v1309_v3 = vunpack.c.l.s4 %v3634_v2  ;;  %v3079_v7 = vld [vmem:[%s3924_s15 + $0x120] ss:$16 sps:$4 sm:$0xff]   ;;  %v4017_v8 = vshrl.u32 %v1285_v0, 7  ;;  %v3080_v56 = vld [vmem:[%s3924_s15 + $0x128] ss:$16 sps:$4 sm:$0xff]   ;;  %s2112_s23 = sshll.u32 %s3607_s18, 2 }
  0xd4   : > { %2133 = vmatpush1.bf16.msra.mxu0 %v3043_v36  ;;  %2389 = vmatpush1.bf16.msra.mxu1 %v3044_v37  ;;  %v3081_v10 = vld [vmem:[%s3924_s15 + $0x144] ss:$16 sps:$4 sm:$0xff]   ;;  %v3083_v57 = vld [vmem:[%s3924_s15 + $0x14c] ss:$16 sps:$4 sm:$0xff]   ;;  %v3085_v60 = vld [vmem:[%s3924_s15 + $0x140] ss:$16 sps:$4 sm:$0xff]  }
  0xd5   : > { %2135 = vmatprep.subr.bf16.mxu0 %v3045_v38  ;;  %2391 = vmatprep.subr.bf16.mxu1 %v3047_v39  ;;  %v1310_v55 = vunpack.c.0.s8 %v1309_v3  ;;  %v3086_v16 = vld [vmem:[%s3924_s15 + $0x148] ss:$16 sps:$4 sm:$0xff]   ;;  %v3087_v12 = vld [vmem:[%s3924_s15 + $0x164] ss:$16 sps:$4 sm:$0xff]   ;;  %v3089_v9 = vld [vmem:[%s3924_s15 + $0x16c] ss:$16 sps:$4 sm:$0xff]  }
  0xd6   : > { %v513_v13 = vld [vmem:[#allocation2] sm:$0xff]  ;;  %v3092_v62 = vld [vmem:[%s3924_s15 + $0x168] ss:$16 sps:$4 sm:$0xff]   ;;  %v3095_v5 = vld [vmem:[%s3924_s15 + $0x18c] ss:$16 sps:$4 sm:$0xff]   ;;  %s2113_s8 = sshll.u32 %s3611_s19, 3 }
  0xd7   : > { %v4025_v11 = vsub.s32 %v1310_v55, %v4017_v8  ;;  %v3091_v14 = vld [vmem:[%s3924_s15 + $0x160] ss:$16 sps:$4 sm:$0xff]   ;;  %v3093_v1 = vld [vmem:[%s3924_s15 + $0x184] ss:$16 sps:$4 sm:$0xff]   ;;  %v3098_v18 = vld [vmem:[%s3924_s15 + $0x188] ss:$16 sps:$4 sm:$0xff]   ;;  %v1307_v29 = vcombine.high %v513_v13, %v513_v13  ;;  %s1953_s11 = sadd.s32 %s2113_s8, %s2112_s23 }
  0xd8   : > { %2137 = vmatpush1.bf16.msra.mxu0 %v3049_v40  ;;  %2393 = vmatpush1.bf16.msra.mxu1 %v3050_v41  ;;  %v3097_v17 = vld [vmem:[%s3924_s15 + $0x180] ss:$16 sps:$4 sm:$0xff]   ;;  %v3099_v19 = vld [vmem:[%s3924_s15 + $0x1a4] ss:$16 sps:$4 sm:$0xff]   ;;  %v3101_v20 = vld [vmem:[%s3924_s15 + $0x1ac] ss:$16 sps:$4 sm:$0xff]  }
  0xd9   : > { %2139 = vmatprep.subr.bf16.mxu0 %v3051_v42  ;;  %2395 = vmatprep.subr.bf16.mxu1 %v3053_v43  ;;  %v1314_v61 = vrot.slane %v513_v13, %v4025_v11  ;;  %v3103_v21 = vld [vmem:[%s3924_s15 + $0x1a0] ss:$16 sps:$4 sm:$0xff]   ;;  %v3104_v22 = vld [vmem:[%s3924_s15 + $0x1a8] ss:$16 sps:$4 sm:$0xff]   ;;  %v3105_v23 = vld [vmem:[%s3924_s15 + $0x1c4] ss:$16 sps:$4 sm:$0xff]   ;;  %v4051_v34 = vrot.slane %v1307_v29, %v4025_v11 }
  0xda   : > { %v3107_v24 = vld [vmem:[%s3924_s15 + $0x1cc] ss:$16 sps:$4 sm:$0xff]   ;;  %v3109_v25 = vld [vmem:[%s3924_s15 + $0x1c0] ss:$16 sps:$4 sm:$0xff]   ;;  %v3110_v26 = vld [vmem:[%s3924_s15 + $0x1c8] ss:$16 sps:$4 sm:$0xff]  }
  0xdb   : > { %v1322_v15 = vcombine.high %v1314_v61, %v1314_v61  ;;  %v3111_v27 = vld [vmem:[%s3924_s15 + $0x1e4] ss:$16 sps:$4 sm:$0xff]   ;;  %v3113_v28 = vld [vmem:[%s3924_s15 + $0x1ec] ss:$16 sps:$4 sm:$0xff]   ;;  %v3115_v30 = vld [vmem:[%s3924_s15 + $0x1e0] ss:$16 sps:$4 sm:$0xff]   ;;  %v1323_v39 = vcombine.high %v4051_v34, %v4051_v34 }
  0xdc   : > { %2141 = vmatpush1.bf16.msra.mxu0 %v3055_v44  ;;  %2397 = vmatpush1.bf16.msra.mxu1 %v3056_v45  ;;  %v3116_v31 = vld [vmem:[%s3924_s15 + $0x1e8] ss:$16 sps:$4 sm:$0xff]   ;;  %v3118_v32 = vld [vmem:[%s3924_s15 + $0x204] ss:$16 sps:$4 sm:$0xff]   ;;  %v3121_v33 = vld [vmem:[%s3924_s15 + $0x20c] ss:$16 sps:$4 sm:$0xff]  }
  0xdd   : > { %2143 = vmatprep.subr.bf16.mxu0 %v3057_v46  ;;  %2399 = vmatprep.subr.bf16.mxu1 %v3059_v47  ;;  %v3120_v35 = vld [vmem:[%s3924_s15 + $0x200] ss:$16 sps:$4 sm:$0xff]   ;;  %v3123_v36 = vld [vmem:[%s3924_s15 + $0x208] ss:$16 sps:$4 sm:$0xff]   ;;  %v3124_v37 = vld [vmem:[%s3924_s15 + $0x224] ss:$16 sps:$4 sm:$0xff]  }
  0xde   : > { %1413 = vmatprep.mubr.f32.mxu0 %v1322_v15  ;;  %1697 = vmatprep.mubr.f32.mxu1 %v1322_v15  ;;  %v3127_v38 = vld [vmem:[%s3924_s15 + $0x22c] ss:$16 sps:$4 sm:$0xff]   ;;  %v3126_v40 = vld [vmem:[%s3924_s15 + $0x220] ss:$16 sps:$4 sm:$0xff]   ;;  %v3129_v41 = vld [vmem:[%s3924_s15 + $0x228] ss:$16 sps:$4 sm:$0xff]  }
  0xdf   : > { %v3130_v42 = vld [vmem:[%s3924_s15 + $0x244] ss:$16 sps:$4 sm:$0xff]   ;;  %v3133_v43 = vld [vmem:[%s3924_s15 + $0x24c] ss:$16 sps:$4 sm:$0xff]   ;;  %v3132_v44 = vld [vmem:[%s3924_s15 + $0x240] ss:$16 sps:$4 sm:$0xff]  }
  0xe0   : > { %2145 = vmatpush1.bf16.msra.mxu0 %v3061_v48  ;;  %2401 = vmatpush1.bf16.msra.mxu1 %v3062_v49  ;;  %v3135_v45 = vld [vmem:[%s3924_s15 + $0x248] ss:$16 sps:$4 sm:$0xff]   ;;  %v3136_v46 = vld [vmem:[%s3924_s15 + $0x264] ss:$16 sps:$4 sm:$0xff]   ;;  %v3139_v47 = vld [vmem:[%s3924_s15 + $0x26c] ss:$16 sps:$4 sm:$0xff]  }
  0xe1   : > { %2147 = vmatprep.subr.bf16.mxu0 %v3063_v50  ;;  %2403 = vmatprep.subr.bf16.mxu1 %v3065_v51  ;;  %v3138_v48 = vld [vmem:[%s3924_s15 + $0x260] ss:$16 sps:$4 sm:$0xff]   ;;  %v3141_v49 = vld [vmem:[%s3924_s15 + $0x268] ss:$16 sps:$4 sm:$0xff]   ;;  %v3142_v50 = vld [vmem:[%s3924_s15 + $0x284] ss:$16 sps:$4 sm:$0xff]  }
  0xe2   : > { %v3145_v51 = vld [vmem:[%s3924_s15 + $0x28c] ss:$16 sps:$4 sm:$0xff]   ;;  %v3154_v0 = vld [vmem:[%s3924_s15 + $0x2c4] ss:$16 sps:$4 sm:$0xff]   ;;  %v3156_v3 = vld [vmem:[%s3924_s15 + $0x2c0] ss:$16 sps:$4 sm:$0xff]  }
  0xe3   : > { %v3157_v2 = vld [vmem:[%s3924_s15 + $0x2cc] ss:$16 sps:$4 sm:$0xff]   ;;  %v3162_v55 = vld [vmem:[%s3924_s15 + $0x2e0] ss:$16 sps:$4 sm:$0xff]   ;;  %v3184_v15 = vld [vmem:[%s3924_s15 + $0x364] ss:$16 sps:$4 sm:$0xff]  }
  0xe4   : > { %2149 = vmatpush1.bf16.msra.mxu0 %v3067_v52  ;;  %2405 = vmatpush1.bf16.msra.mxu1 %v3068_v53  ;;  %v3144_v52 = vld [vmem:[%s3924_s15 + $0x280] ss:$16 sps:$4 sm:$0xff]   ;;  %v3147_v53 = vld [vmem:[%s3924_s15 + $0x288] ss:$16 sps:$4 sm:$0xff]   ;;  %v3205_v29 = vld [vmem:[%s3924_s15 + $0x3cc] ss:$16 sps:$4 sm:$0xff]  }
  0xe5   : > { %2151 = vmatprep.subr.bf16.mxu0 %v3069_v54  ;;  %2407 = vmatprep.subr.bf16.mxu1 %v3071_v58  ;;  %v3148_v54 = vld [vmem:[%s3924_s15 + $0x2a4] ss:$16 sps:$4 sm:$0xff]   ;;  %v3151_v58 = vld [vmem:[%s3924_s15 + $0x2ac] ss:$16 sps:$4 sm:$0xff]   ;;  %v3174_v13 = vld [vmem:[%s3924_s15 + $0x320] ss:$16 sps:$4 sm:$0xff]  }
  0xe6   : > { %s4402_s17 = sld [smem:[#allocation19_spill]]  ;;  %s2114_s24 = sshll.u32 %s1953_s11, 5 }
  0xe7   : > { %s1957_s7 = sshll.u32 %s3934_s1, 4  ;;  %s4403_s29 = sld [smem:[#allocation25_spill]]  ;;  %s4281_s7 = int_to_ptr.vmem [resolvable:$true] %s1957_s7 }
  0xe8   : > { %2153 = vmatpush1.bf16.msra.mxu0 %v3073_v59  ;;  %2409 = vmatpush1.bf16.msra.mxu1 %v3074_v63  ;;  %v3150_v59 = vld [vmem:[%s3924_s15 + $0x2a0] ss:$16 sps:$4 sm:$0xff]   ;;  %v3153_v63 = vld [vmem:[%s3924_s15 + $0x2a8] ss:$16 sps:$4 sm:$0xff]   ;;  %s1941_s14 = scalar_lea.sflag [#allocation5], %s3921_s12  ;;  %s3497_s30 = scalar_lea.vmem %s4281_s7, 128 }
  0xe9   : > { %2155 = vmatprep.subr.bf16.mxu0 %v3075_v4  ;;  %2411 = vmatprep.subr.bf16.mxu1 %v3077_v6  ;;  %v3159_v4 = vld [vmem:[%s3924_s15 + $0x2c8] ss:$16 sps:$4 sm:$0xff]   ;;  %v3160_v6 = vld [vmem:[%s3924_s15 + $0x2e4] ss:$16 sps:$4 sm:$0xff]   ;;  %p3498_p0 = scmp.ne.s32.totalorder %s4281_s7, %s3497_s30  ;;  %s3635_s27 = smov [#allocation9]  }
  0xea   : > { %s3501_s22 = sshll.u32 %s3635_s27, 4  ;;  %s3502_s22 = int_to_ptr.vmem [resolvable:$false] %s3501_s22 }
  0xeb   : > { %s3503_s9 = scalar_lea.vmem %s3502_s22, 256  ;;  %p3504_p3 = scmp.lt.s32.totalorder %s4281_s7, %s3502_s22 }
  0xec   : > { %2157 = vmatpush1.bf16.msra.mxu0 %v3079_v7  ;;  %2413 = vmatpush1.bf16.msra.mxu1 %v3080_v56  ;;  %v3163_v7 = vld [vmem:[%s3924_s15 + $0x2ec] ss:$16 sps:$4 sm:$0xff]   ;;  %v3165_v56 = vld [vmem:[%s3924_s15 + $0x2e8] ss:$16 sps:$4 sm:$0xff]   ;;  %p4404_p4 = scmp.ne.s32.totalorder %s4402_s17, 0  ;;  %p3505_p8 = scmp.lt.s32.totalorder %s3503_s9, %s3497_s30 }
  0xed   : > { %2159 = vmatprep.subr.bf16.mxu0 %v3081_v10  ;;  %2415 = vmatprep.subr.bf16.mxu1 %v3083_v57  ;;  %v3166_v10 = vld [vmem:[%s3924_s15 + $0x304] ss:$16 sps:$4 sm:$0xff]   ;;  %v3169_v57 = vld [vmem:[%s3924_s15 + $0x30c] ss:$16 sps:$4 sm:$0xff]   ;;  %s4279_s0 = scalar_lea.hbm %s4403_s29, %s2114_s24 }
  0xee   : > { %p3499_p2 = pnand %p3498_p0, %p4404_p4  ;;  %p3506_p10 = por %p3505_p8, %p3504_p3 }
  0xf0   : > { %2161 = vmatpush1.bf16.msra.mxu0 %v3085_v60  ;;  %2417 = vmatpush1.bf16.msra.mxu1 %v3086_v16  ;;  %v3168_v60 = vld [vmem:[%s3924_s15 + $0x300] ss:$16 sps:$4 sm:$0xff]   ;;  %v3171_v16 = vld [vmem:[%s3924_s15 + $0x308] ss:$16 sps:$4 sm:$0xff]   ;;  %p3500_p5 = pneg %p3499_p2 }
  0xf1   : > { %2163 = vmatprep.subr.bf16.mxu0 %v3087_v12  ;;  %2419 = vmatprep.subr.bf16.mxu1 %v3089_v9  ;;  %v3172_v12 = vld [vmem:[%s3924_s15 + $0x324] ss:$16 sps:$4 sm:$0xff]   ;;  %v3175_v9 = vld [vmem:[%s3924_s15 + $0x32c] ss:$16 sps:$4 sm:$0xff]  }
  0xf2   : > { %p3507_p11 = pnand %p3506_p10, %p3500_p5 }
  0xf4   : > { %2165 = vmatpush1.bf16.msra.mxu0 %v3091_v14  ;;  %2421 = vmatpush1.bf16.msra.mxu1 %v3092_v62  ;;  %v3177_v14 = vld [vmem:[%s3924_s15 + $0x328] ss:$16 sps:$4 sm:$0xff]   ;;  %v3181_v62 = vld [vmem:[%s3924_s15 + $0x34c] ss:$16 sps:$4 sm:$0xff]  }
  0xf5   : > { %2167 = vmatprep.subr.bf16.mxu0 %v3093_v1  ;;  %2423 = vmatprep.subr.bf16.mxu1 %v3095_v5  ;;  %v3180_v1 = vld [vmem:[%s3924_s15 + $0x340] ss:$16 sps:$4 sm:$0xff]   ;;  %v3183_v5 = vld [vmem:[%s3924_s15 + $0x348] ss:$16 sps:$4 sm:$0xff]  }
  0xf8   : > { %2169 = vmatpush1.bf16.msra.mxu0 %v3097_v17  ;;  %2425 = vmatpush1.bf16.msra.mxu1 %v3098_v18  ;;  %v3187_v17 = vld [vmem:[%s3924_s15 + $0x36c] ss:$16 sps:$4 sm:$0xff]   ;;  %v3186_v18 = vld [vmem:[%s3924_s15 + $0x360] ss:$16 sps:$4 sm:$0xff]  }
  0xf9   : > { %2171 = vmatprep.subr.bf16.mxu0 %v3099_v19  ;;  %2427 = vmatprep.subr.bf16.mxu1 %v3101_v20  ;;  %v3189_v19 = vld [vmem:[%s3924_s15 + $0x368] ss:$16 sps:$4 sm:$0xff]   ;;  %v3190_v20 = vld [vmem:[%s3924_s15 + $0x384] ss:$16 sps:$4 sm:$0xff]  }
  0xfc   : > { %2173 = vmatpush1.bf16.msra.mxu0 %v3103_v21  ;;  %2429 = vmatpush1.bf16.msra.mxu1 %v3104_v22  ;;  %v3193_v21 = vld [vmem:[%s3924_s15 + $0x38c] ss:$16 sps:$4 sm:$0xff]   ;;  %v3192_v22 = vld [vmem:[%s3924_s15 + $0x380] ss:$16 sps:$4 sm:$0xff]  }
  0xfd   : > { %2175 = vmatprep.subr.bf16.mxu0 %v3105_v23  ;;  %2431 = vmatprep.subr.bf16.mxu1 %v3107_v24  ;;  %v3195_v23 = vld [vmem:[%s3924_s15 + $0x388] ss:$16 sps:$4 sm:$0xff]   ;;  %v3196_v24 = vld [vmem:[%s3924_s15 + $0x3a4] ss:$16 sps:$4 sm:$0xff]  }
 0x100   : > { %2177 = vmatpush1.bf16.msra.mxu0 %v3109_v25  ;;  %2433 = vmatpush1.bf16.msra.mxu1 %v3110_v26  ;;  %v3199_v25 = vld [vmem:[%s3924_s15 + $0x3ac] ss:$16 sps:$4 sm:$0xff]   ;;  %v3198_v26 = vld [vmem:[%s3924_s15 + $0x3a0] ss:$16 sps:$4 sm:$0xff]  }
 0x101   : > { %2179 = vmatprep.subr.bf16.mxu0 %v3111_v27  ;;  %2435 = vmatprep.subr.bf16.mxu1 %v3113_v28  ;;  %v3201_v27 = vld [vmem:[%s3924_s15 + $0x3a8] ss:$16 sps:$4 sm:$0xff]   ;;  %v3202_v28 = vld [vmem:[%s3924_s15 + $0x3c4] ss:$16 sps:$4 sm:$0xff]  }
 0x104   : > { %2181 = vmatpush1.bf16.msra.mxu0 %v3115_v30  ;;  %2437 = vmatpush1.bf16.msra.mxu1 %v3116_v31  ;;  %v3204_v30 = vld [vmem:[%s3924_s15 + $0x3c0] ss:$16 sps:$4 sm:$0xff]   ;;  %v3207_v31 = vld [vmem:[%s3924_s15 + $0x3c8] ss:$16 sps:$4 sm:$0xff]  }
 0x105   : > { %2183 = vmatprep.subr.bf16.mxu0 %v3118_v32  ;;  %2439 = vmatprep.subr.bf16.mxu1 %v3121_v33  ;;  %v3208_v32 = vld [vmem:[%s3924_s15 + $0x3e4] ss:$16 sps:$4 sm:$0xff]   ;;  %v3211_v33 = vld [vmem:[%s3924_s15 + $0x3ec] ss:$16 sps:$4 sm:$0xff]  }
 0x107   : > { %1414 = vmatmul.mubr.f32.vlgmr.msra.gmra.mrb[0].mxu0 %v1314_v61  ;;  %1698 = vmatmul.mubr.f32.vlgmr.msra.gmra.mrb[0].mxu1 %v1314_v61  ;;  %v3178_v61 = vld [vmem:[%s3924_s15 + $0x344] ss:$16 sps:$4 sm:$0xff]  }
 0x108   : > { %2185 = vmatpush1.bf16.msra.mxu0 %v3120_v35  ;;  %2441 = vmatpush1.bf16.msra.mxu1 %v3123_v36  ;;  %v3210_v35 = vld [vmem:[%s3924_s15 + $0x3e0] ss:$16 sps:$4 sm:$0xff]   ;;  %v3213_v36 = vld [vmem:[%s3924_s15 + $0x3e8] ss:$16 sps:$4 sm:$0xff]  }
 0x109   : > { %2187 = vmatprep.subr.bf16.mxu0 %v3124_v37  ;;  %2443 = vmatprep.subr.bf16.mxu1 %v3127_v38  ;;  %v3214_v37 = vld [vmem:[%s3924_s15 + $0x404] ss:$16 sps:$4 sm:$0xff]   ;;  %v3217_v38 = vld [vmem:[%s3924_s15 + $0x40c] ss:$16 sps:$4 sm:$0xff]  }
 0x10a   : > { %1484 = vmatprep.mubr.f32.mxu0 %v1323_v39  ;;  %1768 = vmatprep.mubr.f32.mxu1 %v1323_v39  ;;  %v3216_v39 = vld [vmem:[%s3924_s15 + $0x400] ss:$16 sps:$4 sm:$0xff]  }
 0x10c   : > { %2189 = vmatpush1.bf16.msra.mxu0 %v3126_v40  ;;  %2445 = vmatpush1.bf16.msra.mxu1 %v3129_v41  ;;  %v3219_v40 = vld [vmem:[%s3924_s15 + $0x408] ss:$16 sps:$4 sm:$0xff]  }
 0x10d   : > { %2191 = vmatprep.subr.bf16.mxu0 %v3130_v42  ;;  %2447 = vmatprep.subr.bf16.mxu1 %v3133_v43  ;;  %v4121_v41 = vld [vmem:[#allocation2 + $0x8] sm:$0xff]  ;;  %v3220_v42 = vld [vmem:[%s3924_s15 + $0x424] ss:$16 sps:$4 sm:$0xff]  }
 0x10e   : > { %v3223_v43 = vld [vmem:[%s3924_s15 + $0x42c] ss:$16 sps:$4 sm:$0xff]  }
 0x110   : > { %2193 = vmatpush1.bf16.msra.mxu0 %v3132_v44  ;;  %2449 = vmatpush1.bf16.msra.mxu1 %v3135_v45  ;;  %v4127_v44 = vrot.slane %v4121_v41, %v4025_v11 }
 0x111   : > { %2195 = vmatprep.subr.bf16.mxu0 %v3136_v46  ;;  %2451 = vmatprep.subr.bf16.mxu1 %v3139_v47  ;;  %v3222_v46 = vld [vmem:[%s3924_s15 + $0x420] ss:$16 sps:$4 sm:$0xff]   ;;  %v3225_v47 = vld [vmem:[%s3924_s15 + $0x428] ss:$16 sps:$4 sm:$0xff]  }
 0x112   : > { %v1339_v45 = vcombine.high %v4127_v44, %v4127_v44 }
 0x114   : > { %2197 = vmatpush1.bf16.msra.mxu0 %v3138_v48  ;;  %2453 = vmatpush1.bf16.msra.mxu1 %v3141_v49  ;;  %v3226_v48 = vld [vmem:[%s3924_s15 + $0x444] ss:$16 sps:$4 sm:$0xff]   ;;  %v3229_v49 = vld [vmem:[%s3924_s15 + $0x44c] ss:$16 sps:$4 sm:$0xff]  }
 0x115   : > { %2199 = vmatprep.subr.bf16.mxu0 %v3142_v50  ;;  %2455 = vmatprep.subr.bf16.mxu1 %v3145_v51  ;;  %v3231_v50 = vld [vmem:[%s3924_s15 + $0x448] ss:$16 sps:$4 sm:$0xff]   ;;  %v3232_v51 = vld [vmem:[%s3924_s15 + $0x464] ss:$16 sps:$4 sm:$0xff]  }
 0x118   : > { %2201 = vmatpush1.bf16.msra.mxu0 %v3144_v52  ;;  %2457 = vmatpush1.bf16.msra.mxu1 %v3147_v53  ;;  %v3235_v52 = vld [vmem:[%s3924_s15 + $0x46c] ss:$16 sps:$4 sm:$0xff]   ;;  %v3234_v53 = vld [vmem:[%s3924_s15 + $0x460] ss:$16 sps:$4 sm:$0xff]  }
 0x119   : > { %2203 = vmatprep.subr.bf16.mxu0 %v3148_v54  ;;  %2459 = vmatprep.subr.bf16.mxu1 %v3151_v58  ;;  %v3237_v54 = vld [vmem:[%s3924_s15 + $0x468] ss:$16 sps:$4 sm:$0xff]   ;;  %v3238_v58 = vld [vmem:[%s3924_s15 + $0x484] ss:$16 sps:$4 sm:$0xff]  }
 0x11c   : > { %2205 = vmatpush1.bf16.msra.mxu0 %v3150_v59  ;;  %2461 = vmatpush1.bf16.msra.mxu1 %v3153_v63  ;;  %v3241_v59 = vld [vmem:[%s3924_s15 + $0x48c] ss:$16 sps:$4 sm:$0xff]   ;;  %v3240_v63 = vld [vmem:[%s3924_s15 + $0x480] ss:$16 sps:$4 sm:$0xff]  }
 0x11d   : > { %2207 = vmatprep.subr.bf16.mxu0 %v3154_v0  ;;  %2463 = vmatprep.subr.bf16.mxu1 %v3157_v2  ;;  %v3243_v0 = vld [vmem:[%s3924_s15 + $0x488] ss:$16 sps:$4 sm:$0xff]   ;;  %v3244_v2 = vld [vmem:[%s3924_s15 + $0x4a4] ss:$16 sps:$4 sm:$0xff]  }
 0x120   : > { %2209 = vmatpush1.bf16.msra.mxu0 %v3156_v3  ;;  %2465 = vmatpush1.bf16.msra.mxu1 %v3159_v4  ;;  %v3247_v3 = vld [vmem:[%s3924_s15 + $0x4ac] ss:$16 sps:$4 sm:$0xff]   ;;  %v3246_v4 = vld [vmem:[%s3924_s15 + $0x4a0] ss:$16 sps:$4 sm:$0xff]  }
 0x121   : > { %2211 = vmatprep.subr.bf16.mxu0 %v3160_v6  ;;  %2467 = vmatprep.subr.bf16.mxu1 %v3163_v7  ;;  %v3249_v6 = vld [vmem:[%s3924_s15 + $0x4a8] ss:$16 sps:$4 sm:$0xff]   ;;  %v3250_v7 = vld [vmem:[%s3924_s15 + $0x4c4] ss:$16 sps:$4 sm:$0xff]  }
 0x124   : > { %2213 = vmatpush1.bf16.msra.mxu0 %v3162_v55  ;;  %2469 = vmatpush1.bf16.msra.mxu1 %v3165_v56  ;;  %v3253_v55 = vld [vmem:[%s3924_s15 + $0x4cc] ss:$16 sps:$4 sm:$0xff]   ;;  %v3252_v56 = vld [vmem:[%s3924_s15 + $0x4c0] ss:$16 sps:$4 sm:$0xff]  }
 0x125   : > { %2215 = vmatprep.subr.bf16.mxu0 %v3166_v10  ;;  %2471 = vmatprep.subr.bf16.mxu1 %v3169_v57  ;;  %v3255_v10 = vld [vmem:[%s3924_s15 + $0x4c8] ss:$16 sps:$4 sm:$0xff]   ;;  %v3256_v57 = vld [vmem:[%s3924_s15 + $0x4e4] ss:$16 sps:$4 sm:$0xff]  }
 0x128   : > { %2217 = vmatpush1.bf16.msra.mxu0 %v3168_v60  ;;  %2473 = vmatpush1.bf16.msra.mxu1 %v3171_v16  ;;  %v3259_v60 = vld [vmem:[%s3924_s15 + $0x4ec] ss:$16 sps:$4 sm:$0xff]   ;;  %v3258_v16 = vld [vmem:[%s3924_s15 + $0x4e0] ss:$16 sps:$4 sm:$0xff]  }
 0x129   : > { %2219 = vmatprep.subr.bf16.mxu0 %v3172_v12  ;;  %2475 = vmatprep.subr.bf16.mxu1 %v3175_v9  ;;  %v3261_v12 = vld [vmem:[%s3924_s15 + $0x4e8] ss:$16 sps:$4 sm:$0xff]   ;;  %v3262_v9 = vld [vmem:[%s3924_s15 + $0x504] ss:$16 sps:$4 sm:$0xff]  }
 0x12c   : > { %2221 = vmatpush1.bf16.msra.mxu0 %v3174_v13  ;;  %2477 = vmatpush1.bf16.msra.mxu1 %v3177_v14  ;;  %v3265_v13 = vld [vmem:[%s3924_s15 + $0x50c] ss:$16 sps:$4 sm:$0xff]   ;;  %v3264_v14 = vld [vmem:[%s3924_s15 + $0x500] ss:$16 sps:$4 sm:$0xff]  }
 0x12d   : > { %2223 = vmatprep.subr.bf16.mxu0 %v3178_v61  ;;  %2479 = vmatprep.subr.bf16.mxu1 %v3181_v62  ;;  %v3267_v61 = vld [vmem:[%s3924_s15 + $0x508] ss:$16 sps:$4 sm:$0xff]   ;;  %v3268_v62 = vld [vmem:[%s3924_s15 + $0x524] ss:$16 sps:$4 sm:$0xff]  }
 0x130   : > { %2225 = vmatpush1.bf16.msra.mxu0 %v3180_v1  ;;  %2481 = vmatpush1.bf16.msra.mxu1 %v3183_v5  ;;  %v3271_v1 = vld [vmem:[%s3924_s15 + $0x52c] ss:$16 sps:$4 sm:$0xff]   ;;  %v3270_v5 = vld [vmem:[%s3924_s15 + $0x520] ss:$16 sps:$4 sm:$0xff]  }
 0x131   : > { %2227 = vmatprep.subr.bf16.mxu0 %v3184_v15  ;;  %2483 = vmatprep.subr.bf16.mxu1 %v3187_v17  ;;  %v3273_v15 = vld [vmem:[%s3924_s15 + $0x528] ss:$16 sps:$4 sm:$0xff]   ;;  %v3274_v17 = vld [vmem:[%s3924_s15 + $0x544] ss:$16 sps:$4 sm:$0xff]  }
 0x134   : > { %2229 = vmatpush1.bf16.msra.mxu0 %v3186_v18  ;;  %2485 = vmatpush1.bf16.msra.mxu1 %v3189_v19  ;;  %v3277_v18 = vld [vmem:[%s3924_s15 + $0x54c] ss:$16 sps:$4 sm:$0xff]   ;;  %v3276_v19 = vld [vmem:[%s3924_s15 + $0x540] ss:$16 sps:$4 sm:$0xff]  }
 0x135   : > { %2231 = vmatprep.subr.bf16.mxu0 %v3190_v20  ;;  %2487 = vmatprep.subr.bf16.mxu1 %v3193_v21  ;;  %v3279_v20 = vld [vmem:[%s3924_s15 + $0x548] ss:$16 sps:$4 sm:$0xff]   ;;  %v3280_v21 = vld [vmem:[%s3924_s15 + $0x564] ss:$16 sps:$4 sm:$0xff]  }
 0x138   : > { %2233 = vmatpush1.bf16.msra.mxu0 %v3192_v22  ;;  %2489 = vmatpush1.bf16.msra.mxu1 %v3195_v23  ;;  %v3283_v22 = vld [vmem:[%s3924_s15 + $0x56c] ss:$16 sps:$4 sm:$0xff]   ;;  %v3282_v23 = vld [vmem:[%s3924_s15 + $0x560] ss:$16 sps:$4 sm:$0xff]  }
 0x139   : > { %2235 = vmatprep.subr.bf16.mxu0 %v3196_v24  ;;  %2491 = vmatprep.subr.bf16.mxu1 %v3199_v25  ;;  %v3285_v24 = vld [vmem:[%s3924_s15 + $0x568] ss:$16 sps:$4 sm:$0xff]   ;;  %v3286_v25 = vld [vmem:[%s3924_s15 + $0x584] ss:$16 sps:$4 sm:$0xff]  }
 0x13c   : > { %2237 = vmatpush1.bf16.msra.mxu0 %v3198_v26  ;;  %2493 = vmatpush1.bf16.msra.mxu1 %v3201_v27  ;;  %v3289_v26 = vld [vmem:[%s3924_s15 + $0x58c] ss:$16 sps:$4 sm:$0xff]   ;;  %v3288_v27 = vld [vmem:[%s3924_s15 + $0x580] ss:$16 sps:$4 sm:$0xff]  }
 0x13d   : > { %2239 = vmatprep.subr.bf16.mxu0 %v3202_v28  ;;  %2495 = vmatprep.subr.bf16.mxu1 %v3205_v29  ;;  %v3291_v28 = vld [vmem:[%s3924_s15 + $0x588] ss:$16 sps:$4 sm:$0xff]   ;;  %v3292_v29 = vld [vmem:[%s3924_s15 + $0x5a4] ss:$16 sps:$4 sm:$0xff]  }
 0x140   : > { %2241 = vmatpush1.bf16.msra.mxu0 %v3204_v30  ;;  %2497 = vmatpush1.bf16.msra.mxu1 %v3207_v31  ;;  %v3295_v30 = vld [vmem:[%s3924_s15 + $0x5ac] ss:$16 sps:$4 sm:$0xff]   ;;  %v3294_v31 = vld [vmem:[%s3924_s15 + $0x5a0] ss:$16 sps:$4 sm:$0xff]  }
 0x141   : > { %2243 = vmatprep.subr.bf16.mxu0 %v3208_v32  ;;  %2499 = vmatprep.subr.bf16.mxu1 %v3211_v33  ;;  %v3297_v32 = vld [vmem:[%s3924_s15 + $0x5a8] ss:$16 sps:$4 sm:$0xff]   ;;  %v3298_v33 = vld [vmem:[%s3924_s15 + $0x5c4] ss:$16 sps:$4 sm:$0xff]  }
 0x144   : > { %2245 = vmatpush1.bf16.msra.mxu0 %v3210_v35  ;;  %2501 = vmatpush1.bf16.msra.mxu1 %v3213_v36  ;;  %v3301_v35 = vld [vmem:[%s3924_s15 + $0x5cc] ss:$16 sps:$4 sm:$0xff]   ;;  %v3300_v36 = vld [vmem:[%s3924_s15 + $0x5c0] ss:$16 sps:$4 sm:$0xff]  }
 0x145   : > { %2247 = vmatprep.subr.bf16.mxu0 %v3214_v37  ;;  %2503 = vmatprep.subr.bf16.mxu1 %v3217_v38  ;;  %v3303_v37 = vld [vmem:[%s3924_s15 + $0x5c8] ss:$16 sps:$4 sm:$0xff]   ;;  %v3304_v38 = vld [vmem:[%s3924_s15 + $0x5e4] ss:$16 sps:$4 sm:$0xff]  }
 0x147   : > { %1485 = vmatmul.mubr.f32.vlgmr.msra.gmra.mrb[0].mxu0 %v4051_v34  ;;  %1769 = vmatmul.mubr.f32.vlgmr.msra.gmra.mrb[0].mxu1 %v4051_v34  ;;  %v3228_v34 = vld [vmem:[%s3924_s15 + $0x440] ss:$16 sps:$4 sm:$0xff]  }
 0x148   : > { %2249 = vmatpush1.bf16.msra.mxu0 %v3216_v39  ;;  %2505 = vmatpush1.bf16.msra.mxu1 %v3219_v40  ;;  %v3307_v39 = vld [vmem:[%s3924_s15 + $0x5ec] ss:$16 sps:$4 sm:$0xff]   ;;  %v1324_v40 = vcombine.high %v4121_v41, %v4121_v41  ;;  %v3315_v41 = vld [vmem:[%s3924_s15 + $0x608] ss:$16 sps:$4 sm:$0xff]  }
 0x149   : > { %2251 = vmatprep.subr.bf16.mxu0 %v3220_v42  ;;  %2507 = vmatprep.subr.bf16.mxu1 %v3223_v43  ;;  %v3306_v42 = vld [vmem:[%s3924_s15 + $0x5e0] ss:$16 sps:$4 sm:$0xff]   ;;  %v3309_v43 = vld [vmem:[%s3924_s15 + $0x5e8] ss:$16 sps:$4 sm:$0xff]  }
 0x14a   : > { %1555 = vmatprep.mubr.f32.mxu0 %v1339_v45  ;;  %1839 = vmatprep.mubr.f32.mxu1 %v1339_v45  ;;  %v3310_v45 = vld [vmem:[%s3924_s15 + $0x604] ss:$16 sps:$4 sm:$0xff]  }
 0x14c   : > { %2253 = vmatpush1.bf16.msra.mxu0 %v3222_v46  ;;  %2509 = vmatpush1.bf16.msra.mxu1 %v3225_v47  ;;  %v3313_v46 = vld [vmem:[%s3924_s15 + $0x60c] ss:$16 sps:$4 sm:$0xff]   ;;  %v4196_v47 = vrot.slane %v1324_v40, %v4025_v11 }
 0x14d   : > { %2255 = vmatprep.subr.bf16.mxu0 %v3226_v48  ;;  %2511 = vmatprep.subr.bf16.mxu1 %v3229_v49  ;;  %v3312_v48 = vld [vmem:[%s3924_s15 + $0x600] ss:$16 sps:$4 sm:$0xff]   ;;  %v3316_v49 = vld [vmem:[%s3924_s15 + $0x624] ss:$16 sps:$4 sm:$0xff]   ;;  %v3397_v40 = vld [vmem:[%s3924_s15 + $0x7cc] ss:$16 sps:$4 sm:$0xff]  }
 0x150   : > { %2257 = vmatpush1.bf16.msra.mxu0 %v3228_v34  ;;  %2513 = vmatpush1.bf16.msra.mxu1 %v3231_v50  ;;  %v3319_v34 = vld [vmem:[%s3924_s15 + $0x62c] ss:$16 sps:$4 sm:$0xff]   ;;  %v1340_v50 = vcombine.high %v4196_v47, %v4196_v47 }
 0x151   : > { %2259 = vmatprep.subr.bf16.mxu0 %v3232_v51  ;;  %2515 = vmatprep.subr.bf16.mxu1 %v3235_v52  ;;  %v3318_v51 = vld [vmem:[%s3924_s15 + $0x620] ss:$16 sps:$4 sm:$0xff]   ;;  %v3321_v52 = vld [vmem:[%s3924_s15 + $0x628] ss:$16 sps:$4 sm:$0xff]  }
 0x154   : > { %2261 = vmatpush1.bf16.msra.mxu0 %v3234_v53  ;;  %2517 = vmatpush1.bf16.msra.mxu1 %v3237_v54  ;;  %v3322_v53 = vld [vmem:[%s3924_s15 + $0x644] ss:$16 sps:$4 sm:$0xff]   ;;  %v3325_v54 = vld [vmem:[%s3924_s15 + $0x64c] ss:$16 sps:$4 sm:$0xff]  }
 0x155   : > { %2263 = vmatprep.subr.bf16.mxu0 %v3238_v58  ;;  %2519 = vmatprep.subr.bf16.mxu1 %v3241_v59  ;;  %v3324_v58 = vld [vmem:[%s3924_s15 + $0x640] ss:$16 sps:$4 sm:$0xff]   ;;  %v3328_v59 = vld [vmem:[%s3924_s15 + $0x664] ss:$16 sps:$4 sm:$0xff]  }
 0x158   : > { %2265 = vmatpush1.bf16.msra.mxu0 %v3240_v63  ;;  %2521 = vmatpush1.bf16.msra.mxu1 %v3243_v0  ;;  %v3331_v63 = vld [vmem:[%s3924_s15 + $0x66c] ss:$16 sps:$4 sm:$0xff]   ;;  %v3330_v0 = vld [vmem:[%s3924_s15 + $0x660] ss:$16 sps:$4 sm:$0xff]  }
 0x159   : > { %2267 = vmatprep.subr.bf16.mxu0 %v3244_v2  ;;  %2523 = vmatprep.subr.bf16.mxu1 %v3247_v3  ;;  %v3333_v2 = vld [vmem:[%s3924_s15 + $0x668] ss:$16 sps:$4 sm:$0xff]   ;;  %v3334_v3 = vld [vmem:[%s3924_s15 + $0x684] ss:$16 sps:$4 sm:$0xff]  }
 0x15c   : > { %2269 = vmatpush1.bf16.msra.mxu0 %v3246_v4  ;;  %2525 = vmatpush1.bf16.msra.mxu1 %v3249_v6  ;;  %v3337_v4 = vld [vmem:[%s3924_s15 + $0x68c] ss:$16 sps:$4 sm:$0xff]   ;;  %v3336_v6 = vld [vmem:[%s3924_s15 + $0x680] ss:$16 sps:$4 sm:$0xff]  }
 0x15d   : > { %2271 = vmatprep.subr.bf16.mxu0 %v3250_v7  ;;  %2527 = vmatprep.subr.bf16.mxu1 %v3253_v55  ;;  %v3339_v7 = vld [vmem:[%s3924_s15 + $0x688] ss:$16 sps:$4 sm:$0xff]   ;;  %v3340_v55 = vld [vmem:[%s3924_s15 + $0x6a4] ss:$16 sps:$4 sm:$0xff]  }
 0x160   : > { %2273 = vmatpush1.bf16.msra.mxu0 %v3252_v56  ;;  %2529 = vmatpush1.bf16.msra.mxu1 %v3255_v10  ;;  %v3343_v56 = vld [vmem:[%s3924_s15 + $0x6ac] ss:$16 sps:$4 sm:$0xff]   ;;  %v3342_v10 = vld [vmem:[%s3924_s15 + $0x6a0] ss:$16 sps:$4 sm:$0xff]  }
 0x161   : > { %2275 = vmatprep.subr.bf16.mxu0 %v3256_v57  ;;  %2531 = vmatprep.subr.bf16.mxu1 %v3259_v60  ;;  %v3345_v57 = vld [vmem:[%s3924_s15 + $0x6a8] ss:$16 sps:$4 sm:$0xff]   ;;  %v3346_v60 = vld [vmem:[%s3924_s15 + $0x6c4] ss:$16 sps:$4 sm:$0xff]  }
 0x164   : > { %2277 = vmatpush1.bf16.msra.mxu0 %v3258_v16  ;;  %2533 = vmatpush1.bf16.msra.mxu1 %v3261_v12  ;;  %v3349_v16 = vld [vmem:[%s3924_s15 + $0x6cc] ss:$16 sps:$4 sm:$0xff]   ;;  %v3348_v12 = vld [vmem:[%s3924_s15 + $0x6c0] ss:$16 sps:$4 sm:$0xff]  }
 0x165   : > { %2279 = vmatprep.subr.bf16.mxu0 %v3262_v9  ;;  %2535 = vmatprep.subr.bf16.mxu1 %v3265_v13  ;;  %v3351_v9 = vld [vmem:[%s3924_s15 + $0x6c8] ss:$16 sps:$4 sm:$0xff]   ;;  %v3352_v13 = vld [vmem:[%s3924_s15 + $0x6e4] ss:$16 sps:$4 sm:$0xff]  }
 0x168   : > { %2281 = vmatpush1.bf16.msra.mxu0 %v3264_v14  ;;  %2537 = vmatpush1.bf16.msra.mxu1 %v3267_v61  ;;  %v3355_v14 = vld [vmem:[%s3924_s15 + $0x6ec] ss:$16 sps:$4 sm:$0xff]   ;;  %v3354_v61 = vld [vmem:[%s3924_s15 + $0x6e0] ss:$16 sps:$4 sm:$0xff]  }
 0x169   : > { %2283 = vmatprep.subr.bf16.mxu0 %v3268_v62  ;;  %2539 = vmatprep.subr.bf16.mxu1 %v3271_v1  ;;  %v3357_v62 = vld [vmem:[%s3924_s15 + $0x6e8] ss:$16 sps:$4 sm:$0xff]   ;;  %v3358_v1 = vld [vmem:[%s3924_s15 + $0x704] ss:$16 sps:$4 sm:$0xff]  }
 0x16c   : > { %2285 = vmatpush1.bf16.msra.mxu0 %v3270_v5  ;;  %2541 = vmatpush1.bf16.msra.mxu1 %v3273_v15  ;;  %v3361_v5 = vld [vmem:[%s3924_s15 + $0x70c] ss:$16 sps:$4 sm:$0xff]   ;;  %v3360_v15 = vld [vmem:[%s3924_s15 + $0x700] ss:$16 sps:$4 sm:$0xff]  }
 0x16d   : > { %2287 = vmatprep.subr.bf16.mxu0 %v3274_v17  ;;  %2543 = vmatprep.subr.bf16.mxu1 %v3277_v18  ;;  %v3363_v17 = vld [vmem:[%s3924_s15 + $0x708] ss:$16 sps:$4 sm:$0xff]   ;;  %v3364_v18 = vld [vmem:[%s3924_s15 + $0x724] ss:$16 sps:$4 sm:$0xff]  }
 0x170   : > { %2289 = vmatpush1.bf16.msra.mxu0 %v3276_v19  ;;  %2545 = vmatpush1.bf16.msra.mxu1 %v3279_v20  ;;  %v3367_v19 = vld [vmem:[%s3924_s15 + $0x72c] ss:$16 sps:$4 sm:$0xff]   ;;  %v3366_v20 = vld [vmem:[%s3924_s15 + $0x720] ss:$16 sps:$4 sm:$0xff]  }
 0x171   : > { %2291 = vmatprep.subr.bf16.mxu0 %v3280_v21  ;;  %2547 = vmatprep.subr.bf16.mxu1 %v3283_v22  ;;  %v3369_v21 = vld [vmem:[%s3924_s15 + $0x728] ss:$16 sps:$4 sm:$0xff]   ;;  %v3370_v22 = vld [vmem:[%s3924_s15 + $0x744] ss:$16 sps:$4 sm:$0xff]  }
 0x174   : > { %2293 = vmatpush1.bf16.msra.mxu0 %v3282_v23  ;;  %2549 = vmatpush1.bf16.msra.mxu1 %v3285_v24  ;;  %v3373_v23 = vld [vmem:[%s3924_s15 + $0x74c] ss:$16 sps:$4 sm:$0xff]   ;;  %v3372_v24 = vld [vmem:[%s3924_s15 + $0x740] ss:$16 sps:$4 sm:$0xff]  }
 0x175   : > { %2295 = vmatprep.subr.bf16.mxu0 %v3286_v25  ;;  %2551 = vmatprep.subr.bf16.mxu1 %v3289_v26  ;;  %v3375_v25 = vld [vmem:[%s3924_s15 + $0x748] ss:$16 sps:$4 sm:$0xff]   ;;  %v3376_v26 = vld [vmem:[%s3924_s15 + $0x764] ss:$16 sps:$4 sm:$0xff]  }
 0x178   : > { %2297 = vmatpush1.bf16.msra.mxu0 %v3288_v27  ;;  %2553 = vmatpush1.bf16.msra.mxu1 %v3291_v28  ;;  %v3379_v27 = vld [vmem:[%s3924_s15 + $0x76c] ss:$16 sps:$4 sm:$0xff]   ;;  %v3378_v28 = vld [vmem:[%s3924_s15 + $0x760] ss:$16 sps:$4 sm:$0xff]  }
 0x179   : > { %2299 = vmatprep.subr.bf16.mxu0 %v3292_v29  ;;  %2555 = vmatprep.subr.bf16.mxu1 %v3295_v30  ;;  %v3381_v29 = vld [vmem:[%s3924_s15 + $0x768] ss:$16 sps:$4 sm:$0xff]   ;;  %v3382_v30 = vld [vmem:[%s3924_s15 + $0x784] ss:$16 sps:$4 sm:$0xff]  }
 0x17c   : > { %2301 = vmatpush1.bf16.msra.mxu0 %v3294_v31  ;;  %2557 = vmatpush1.bf16.msra.mxu1 %v3297_v32  ;;  %v3385_v31 = vld [vmem:[%s3924_s15 + $0x78c] ss:$16 sps:$4 sm:$0xff]   ;;  %v3384_v32 = vld [vmem:[%s3924_s15 + $0x780] ss:$16 sps:$4 sm:$0xff]  }
 0x17d   : > { %2303 = vmatprep.subr.bf16.mxu0 %v3298_v33  ;;  %2559 = vmatprep.subr.bf16.mxu1 %v3301_v35  ;;  %v3387_v33 = vld [vmem:[%s3924_s15 + $0x788] ss:$16 sps:$4 sm:$0xff]   ;;  %v3388_v35 = vld [vmem:[%s3924_s15 + $0x7a4] ss:$16 sps:$4 sm:$0xff]  }
 0x180   : > { %2305 = vmatpush1.bf16.msra.mxu0 %v3300_v36  ;;  %2561 = vmatpush1.bf16.msra.mxu1 %v3303_v37  ;;  %v3391_v36 = vld [vmem:[%s3924_s15 + $0x7ac] ss:$16 sps:$4 sm:$0xff]   ;;  %v3390_v37 = vld [vmem:[%s3924_s15 + $0x7a0] ss:$16 sps:$4 sm:$0xff]  }
 0x181   : > { %2307 = vmatprep.subr.bf16.mxu0 %v3304_v38  ;;  %2563 = vmatprep.subr.bf16.mxu1 %v3307_v39  ;;  %v3393_v38 = vld [vmem:[%s3924_s15 + $0x7a8] ss:$16 sps:$4 sm:$0xff]   ;;  %v3394_v39 = vld [vmem:[%s3924_s15 + $0x7c4] ss:$16 sps:$4 sm:$0xff]  }
 0x184   : > { %2309 = vmatpush1.bf16.msra.mxu0 %v3306_v42  ;;  %2565 = vmatpush1.bf16.msra.mxu1 %v3309_v43  ;;  %v3396_v42 = vld [vmem:[%s3924_s15 + $0x7c0] ss:$16 sps:$4 sm:$0xff]   ;;  %v3399_v43 = vld [vmem:[%s3924_s15 + $0x7c8] ss:$16 sps:$4 sm:$0xff]  }
 0x185   : > { %2311 = vmatprep.subr.bf16.mxu0 %v3310_v45  ;;  %2567 = vmatprep.subr.bf16.mxu1 %v3313_v46  ;;  %v3400_v45 = vld [vmem:[%s3924_s15 + $0x7e4] ss:$16 sps:$4 sm:$0xff]   ;;  %v3403_v46 = vld [vmem:[%s3924_s15 + $0x7ec] ss:$16 sps:$4 sm:$0xff]  }
 0x187   : > { %1556 = vmatmul.mubr.f32.vlgmr.msra.gmra.mrb[0].mxu0 %v4127_v44  ;;  %1840 = vmatmul.mubr.f32.vlgmr.msra.gmra.mrb[0].mxu1 %v4127_v44  ;;  %v3327_v44 = vld [vmem:[%s3924_s15 + $0x648] ss:$16 sps:$4 sm:$0xff]  }
 0x188   : > { %2313 = vmatpush1.bf16.msra.mxu0 %v3312_v48  ;;  %2569 = vmatpush1.bf16.msra.mxu1 %v3315_v41  ;;  %v3402_v48 = vld [vmem:[%s3924_s15 + $0x7e0] ss:$16 sps:$4 sm:$0xff]   ;;  %v3405_v41 = vld [vmem:[%s3924_s15 + $0x7e8] ss:$16 sps:$4 sm:$0xff]  }
 0x189   : > { %2315 = vmatprep.subr.bf16.mxu0 %v3316_v49  ;;  %2571 = vmatprep.subr.bf16.mxu1 %v3319_v34  ;;  %v1287_v49 = vsub.s32 0, %v4017_v8  ;;  %v1295_v34 = vsub.s32 2, %v4017_v8 }
 0x18a   : > { %1626 = vmatprep.mubr.f32.mxu0 %v1340_v50  ;;  %1910 = vmatprep.mubr.f32.mxu1 %v1340_v50  ;;  %v1283_v50 = vld [vmem:[%s3932_s10] sm:$0xf] }
 0x18c   : > { %2317 = vmatpush1.bf16.msra.mxu0 %v3318_v51  ;;  %2573 = vmatpush1.bf16.msra.mxu1 %v3321_v52  ;;  %v1291_v51 = vsub.s32 1, %v4017_v8  ;;  %v1299_v52 = vsub.s32 3, %v4017_v8 }
 0x18d   : > { %2319 = vmatprep.subr.bf16.mxu0 %v3322_v53  ;;  %2575 = vmatprep.subr.bf16.mxu1 %v3325_v54  ;;  %v1288_v53 = vrot.slane %v1283_v50, %v1287_v49  ;;  %v1296_v54 = vrot.slane %v1283_v50, %v1295_v34 }
 0x190   : > { %2321 = vmatpush1.bf16.msra.mxu0 %v3324_v58  ;;  %2577 = vmatpush1.bf16.msra.mxu1 %v3327_v44  ;;  %v1292_v58 = vrot.slane %v1283_v50, %v1291_v51  ;;  %v1300_v44 = vrot.slane %v1283_v50, %v1299_v52 }
 0x191   : > { %2323 = vmatprep.subr.bf16.mxu0 %v3328_v59  ;;  %2579 = vmatprep.subr.bf16.mxu1 %v3331_v63 }
 0x194   : > { %2325 = vmatpush1.bf16.msra.mxu0 %v3330_v0  ;;  %2581 = vmatpush1.bf16.msra.mxu1 %v3333_v2 }
 0x195   : > { %2327 = vmatprep.subr.bf16.mxu0 %v3334_v3  ;;  %2583 = vmatprep.subr.bf16.mxu1 %v3337_v4 }
 0x198   : > { %2329 = vmatpush1.bf16.msra.mxu0 %v3336_v6  ;;  %2585 = vmatpush1.bf16.msra.mxu1 %v3339_v7 }
 0x199   : > { %2331 = vmatprep.subr.bf16.mxu0 %v3340_v55  ;;  %2587 = vmatprep.subr.bf16.mxu1 %v3343_v56 }
 0x19c   : > { %2333 = vmatpush1.bf16.msra.mxu0 %v3342_v10  ;;  %2589 = vmatpush1.bf16.msra.mxu1 %v3345_v57 }
 0x19d   : > { %2335 = vmatprep.subr.bf16.mxu0 %v3346_v60  ;;  %2591 = vmatprep.subr.bf16.mxu1 %v3349_v16 }
 0x1a0   : > { %2337 = vmatpush1.bf16.msra.mxu0 %v3348_v12  ;;  %2593 = vmatpush1.bf16.msra.mxu1 %v3351_v9 }
 0x1a1   : > { %2339 = vmatprep.subr.bf16.mxu0 %v3352_v13  ;;  %2595 = vmatprep.subr.bf16.mxu1 %v3355_v14 }
 0x1a4   : > { %2341 = vmatpush1.bf16.msra.mxu0 %v3354_v61  ;;  %2597 = vmatpush1.bf16.msra.mxu1 %v3357_v62 }
 0x1a5   : > { %2343 = vmatprep.subr.bf16.mxu0 %v3358_v1  ;;  %2599 = vmatprep.subr.bf16.mxu1 %v3361_v5 }
 0x1a8   : > { %2345 = vmatpush1.bf16.msra.mxu0 %v3360_v15  ;;  %2601 = vmatpush1.bf16.msra.mxu1 %v3363_v17 }
 0x1a9   : > { %2347 = vmatprep.subr.bf16.mxu0 %v3364_v18  ;;  %2603 = vmatprep.subr.bf16.mxu1 %v3367_v19 }
 0x1ac   : > { %2349 = vmatpush1.bf16.msra.mxu0 %v3366_v20  ;;  %2605 = vmatpush1.bf16.msra.mxu1 %v3369_v21 }
 0x1ad   : > { %2351 = vmatprep.subr.bf16.mxu0 %v3370_v22  ;;  %2607 = vmatprep.subr.bf16.mxu1 %v3373_v23 }
 0x1b0   : > { %2353 = vmatpush1.bf16.msra.mxu0 %v3372_v24  ;;  %2609 = vmatpush1.bf16.msra.mxu1 %v3375_v25 }
 0x1b1   : > { %2355 = vmatprep.subr.bf16.mxu0 %v3376_v26  ;;  %2611 = vmatprep.subr.bf16.mxu1 %v3379_v27 }
 0x1b4   : > { %2357 = vmatpush1.bf16.msra.mxu0 %v3378_v28  ;;  %2613 = vmatpush1.bf16.msra.mxu1 %v3381_v29 }
 0x1b5   : > { %2359 = vmatprep.subr.bf16.mxu0 %v3382_v30  ;;  %2615 = vmatprep.subr.bf16.mxu1 %v3385_v31 }
 0x1b8   : > { %2361 = vmatpush1.bf16.msra.mxu0 %v3384_v32  ;;  %2617 = vmatpush1.bf16.msra.mxu1 %v3387_v33 }
 0x1b9   : > { %2363 = vmatprep.subr.bf16.mxu0 %v3388_v35  ;;  %2619 = vmatprep.subr.bf16.mxu1 %v3391_v36 }
 0x1bc   : > { %2365 = vmatpush1.bf16.msra.mxu0 %v3390_v37  ;;  %2621 = vmatpush1.bf16.msra.mxu1 %v3393_v38 }
 0x1bd   : > { %2367 = vmatprep.subr.bf16.mxu0 %v3394_v39  ;;  %2623 = vmatprep.subr.bf16.mxu1 %v3397_v40 }
 0x1c0   : > { %2369 = vmatpush1.bf16.msra.mxu0 %v3396_v42  ;;  %2625 = vmatpush1.bf16.msra.mxu1 %v3399_v43 }
 0x1c1   : > { %2371 = vmatprep.subr.bf16.mxu0 %v3400_v45  ;;  %2627 = vmatprep.subr.bf16.mxu1 %v3403_v46 }
 0x1c4   : > { %2373 = vmatpush1.bf16.msra.mxu0 %v3402_v48  ;;  %2629 = vmatpush1.bf16.msra.mxu1 %v3405_v41 }
 0x1c7   : > { %1627 = vmatmul.mubr.f32.vlgmr.msra.gmra.mrb[0].mxu0 %v4196_v47  ;;  %1911 = vmatmul.mubr.f32.vlgmr.msra.gmra.mrb[0].mxu1 %v4196_v47 }
 0x29a   : > { %v1628_v59 = vpop.f32.mrb[0].mxu0  ;;  %v1912_v63 = vpop.f32.mrb[0].mxu1 }
 0x29b   : > { %v2630_v0 = vadd.f32 %v1628_v59, %v1288_v53  ;;  %v2632_v47 = vadd.f32 %v1912_v63, %v1296_v54  ;;  %v1630_v2 = vpop.f32.mrb[1].mxu0  ;;  %v1914_v3 = vpop.f32.mrb[1].mxu1 }
 0x29c   : > { %v2631_v4 = vadd.f32 %v1630_v2, %v1292_v58  ;;  %v2633_v6 = vadd.f32 %v1914_v3, %v1300_v44 }
 0x29e   : > { %v1921_v8 = vcombine.low %v2630_v0, %v2631_v4  ;;  %v1922_v7 = vcombine.low %v2632_v47, %v2633_v6 }
 0x2a0   : > { %v1929_v55 = vrot.slane %v1921_v8, %v4025_v11  ;;  %v1936_v56 = vrot.slane %v1922_v7, %v4025_v11 }
 0x2a2   : > { %v1937_v10 = vcombine.low %v1929_v55, %v1936_v56 }
 0x2a4   : > { %1939 = vst [vmem:[%s3934_s1] sm:$0xff] %v1937_v10 }
 0x2a5   : > { %3510 = shalt.err (!%p3507_p11)
}
 0x2a6   : > { %s3511_s3 = scalar_lea.hbm %s4279_s0, 128  ;;  %s3515_s12 = scalar_lea.hbm %s4403_s29, 512 }
 0x2a7   : > { %p3512_p6 = scmp.ne.s32.totalorder %s4279_s0, %s3511_s3  ;;  %p3516_p7 = scmp.lt.u32.totalorder %s4279_s0, %s4403_s29 }
 0x2a8   : > { %p3517_p13 = scmp.lt.u32.totalorder %s3515_s12, %s3511_s3  ;;  %p3519_p0 = scmp.lt.u32.totalorder %s3511_s3, %s4279_s0 }
 0x2a9   : > { %p3513_p12 = pnand %p3512_p6, %p4404_p4 }
 0x2aa   : > { %p3518_p9 = por %p3517_p13, %p3516_p7 }
 0x2ab   : > { %p3514_p1 = pneg %p3513_p12 }
 0x2ac   : > { %p3520_p2 = por %p3519_p0, %p3518_p9 }
 0x2ae   : > { %p3521_p5 = pnand %p3520_p2, %p3514_p1 }
 0x2b0   : > { %3524 = shalt.err (!%p3521_p5)
}
 0x2b1   : > { %2908 = dma.vmem_to_hbm [thread:$0]  (%p4404_p4), %s4281_s7, 128, %s4279_s0, %s1941_s14  }
 0x2b2 PF: > { %s4405_s15 = sld [smem:[#allocation16_spill]]  ;;  %s4406_s26 = sld [smem:[#allocation13_spill]] }
 0x2b3   : > { %s4407_s4 = sld [smem:[#allocation20_spill]] }
 0x2b8   : > { %p2925_p3 = scmp.ge.s32.totalorder %s4405_s15, 2  ;;  %s1969_s10 = sand.u32 1, %s4406_s26  }
 0x2b9   : > { %p4408_p8 = scmp.ne.s32.totalorder %s4407_s4, 0  ;;  %s1970_s1 = scalar_lea.sflag [#allocation5], %s1969_s10 }
 0x2bb   : > { %p2921_p10 = pnand %p2925_p3, %p4408_p8 }
 0x2bd   : > { %3578 = dma.done.wait (!%p2921_p10), %s1970_s1, 128  }
 0x2be   : > { %3580 = vsyncadd (!%p2921_p10), %s1970_s1, 4294967168  ;;  %s22_s22 = sadd.s32 1, %s4405_s15   ;;  %s4409_s23 = sld [smem:[#allocation14_spill]] }
 0x2bf   : > { %p19_p11 = scmp.ge.s32.totalorder %s22_s22, 6   ;;  %s4410_s14 = sld [smem:[#allocation21_spill]] }
 0x2c0   : > { %s4411_s8 = sld [smem:[#allocation15_spill]]  ;;  %s4412_s17 = sld [smem:[#allocation22_spill]] }
 0x2c1   : > { %s4413_s11 = sld [smem:[#allocation17_spill]]  ;;  %s4414_s24 = sld [smem:[#allocation18_spill]] }
 0x2c2   : > { %s4415_s12 = smov %s3587_s13  ;;  %s4417_s15 = smov %s3599_s16 }
 0x2c3   : > { %s4419_s18 = smov %s3615_s20  ;;  %s4420_s19 = smov %s3619_s21 }
 0x2c4   : > { %s4416_s13 = smov %s4409_s23  ;;  %21 = sbr.rel (!%p19_p11) target bundleno = 15 (0xf), region = 105 }
 0x2c6   : > { %s4418_s16 = smov %s4411_s8 }
 0x2c7   : > { %s4421_s20 = smov %s4413_s11  ;;  %s4422_s21 = smov %s4414_s24 }
 0x2cb   :  { %1975 = vsyncpa [#allocation4], 1 }
 0x2cc   :  { %1977 = vsyncpa [#allocation4 + $0x1], 1 }
 0x2cd   :  { %1978 = vsyncpa [#allocation7], 1 }
 0x2ce   :  { %1980 = vsyncpa [#allocation7 + $0x1], 1 }
 0x2cf   :  { %1981 = vsyncpa [#allocation5], 1 }
 0x2d0   :  { %1983 = vsyncpa [#allocation5 + $0x1], 1 }

</bundles_post_ra>
